<compile_context>
chip_gen: v7x
topology: tpu7x:2x2x1
jax: 0.10.0
libtpu: 0.0.40
codegen_flags: <defaults>
</compile_context>

<pallas_src>
import numpy as np
import jax
import jax.numpy as jnp
from jax.experimental import pallas as pl
from jax.experimental.pallas import tpu as pltpu

KSIZE = 3
PAD = (KSIZE - 1) // 2


# -----------------------------------------------------------------------------
# Fused Net4 kernel: 4 conv layers, activations resident on-chip.
# -----------------------------------------------------------------------------
def _make_net4_kernel(W, NHW):
    def kernel(x_ref, masks_ref,
               w1_ref, b1_ref, w2_ref, b2_ref, w3_ref, b3_ref, w4_ref, b4_ref,
               o_ref):
        # x_ref:     (Cpad, NHW)       channels on sublanes, flat (n,y,x) on lanes
        # masks_ref: (K*K, 1, NHW)     1.0 where the tap's source pixel is in-bounds
        # w*_ref:    (K*K, Cout, Cin)  tap-major folded conv weights
        # b*_ref:    (Cout, 1)
        # o_ref:     (3, NHW)

        def conv_layer(act, w_ref, b_ref, relu):
            cout = w_ref.shape[1]
            acc = jnp.zeros((cout, NHW), jnp.float32)
            for ky in range(KSIZE):
                for kx in range(KSIZE):
                    t = ky * KSIZE + kx
                    s = (ky - PAD) * W + (kx - PAD)   # flat offset of this tap's source
                    if s == 0:
                        shifted = act
                    else:
                        # shifted[p] = act[(p + s) % NHW]; wrapped / out-of-image
                        # positions are zeroed by the mask below, which also keeps
                        # batch images from leaking into each other.
                        shifted = pltpu.roll(act, (-s) % NHW, 1)
                    shifted = shifted * masks_ref[t]
                    acc = acc + jnp.dot(w_ref[t], shifted,
                                        preferred_element_type=jnp.float32)
            acc = acc + b_ref[...]
            return jnp.maximum(acc, 0.0) if relu else acc

        act = x_ref[...]
        act = conv_layer(act, w1_ref, b1_ref, True)
        act = conv_layer(act, w2_ref, b2_ref, True)
        act = conv_layer(act, w3_ref, b3_ref, True)
        out = conv_layer(act, w4_ref, b4_ref, False)
        o_ref[...] = out.astype(o_ref.dtype)

    return kernel


# -----------------------------------------------------------------------------
# Layout glue (pure transposes/reshapes/constants, no conv compute).
# -----------------------------------------------------------------------------
def _tap_masks(N, H, W):
    """(K*K, 1, N*H*W) f32 validity masks for each conv tap (handles zero pad)."""
    NHW = N * H * W
    p = np.arange(NHW)
    y = (p // W) % H
    x = p % W
    m = np.zeros((KSIZE * KSIZE, 1, NHW), np.float32)
    for ky in range(KSIZE):
        for kx in range(KSIZE):
            dy, dx = ky - PAD, kx - PAD
            ok = (y + dy >= 0) & (y + dy < H) & (x + dx >= 0) & (x + dx < W)
            m[ky * KSIZE + kx, 0] = ok
    return jnp.asarray(m)


def _fold_weight(w, cin_pad):
    """(Cout, Cin, K, K) -> (K*K, Cout, Cin_pad), tap-major, zero-padded Cin."""
    cout, cin, k, _ = w.shape
    if cin_pad > cin:
        w = jnp.concatenate(
            [w, jnp.zeros((cout, cin_pad - cin, k, k), w.dtype)], axis=1)
    cin2 = w.shape[1]
    return jnp.transpose(w, (2, 3, 0, 1)).reshape(k * k, cout, cin2)


@jax.jit
def net4_forward(x, params):
    N, Cin, H, W = x.shape
    NHW = N * H * W
    C = params["w1"].shape[0]       # num_kernels
    Cout4 = params["w4"].shape[0]   # 3
    Cpad = max(C, Cin)

    # activations: channels on sublanes, flat (n, y, x) on lanes.
    x_cp = jnp.transpose(x, (1, 0, 2, 3)).reshape(Cin, NHW).astype(jnp.float32)
    if Cpad > Cin:
        x_cp = jnp.concatenate(
            [x_cp, jnp.zeros((Cpad - Cin, NHW), jnp.float32)], axis=0)
    masks = _tap_masks(N, H, W)

    w1 = _fold_weight(params["w1"], Cpad)
    w2 = _fold_weight(params["w2"], C)
    w3 = _fold_weight(params["w3"], C)
    w4 = _fold_weight(params["w4"], C)
    b1 = params["b1"].reshape(-1, 1).astype(jnp.float32)
    b2 = params["b2"].reshape(-1, 1).astype(jnp.float32)
    b3 = params["b3"].reshape(-1, 1).astype(jnp.float32)
    b4 = params["b4"].reshape(-1, 1).astype(jnp.float32)

    def vmem():
        return pl.BlockSpec(memory_space=pltpu.MemorySpace.VMEM)

    out = pl.pallas_call(
        _make_net4_kernel(W, NHW),
        out_shape=jax.ShapeDtypeStruct((Cout4, NHW), jnp.float32),
        in_specs=[vmem() for _ in range(10)],
        out_specs=vmem(),
    )(x_cp, masks, w1, b1, w2, b2, w3, b3, w4, b4)

    return jnp.transpose(out.reshape(Cout4, N, H, W), (1, 0, 2, 3))


# -----------------------------------------------------------------------------
# Deterministic parameter init (PyTorch Conv2d default: U(-1/sqrt(fan_in), +))
# -----------------------------------------------------------------------------
def init_net4_params(key, kernel_size, num_kernels):
    shapes = [
        (num_kernels, 1, kernel_size, kernel_size),
        (num_kernels, num_kernels, kernel_size, kernel_size),
        (num_kernels, num_kernels, kernel_size, kernel_size),
        (3, num_kernels, kernel_size, kernel_size),
    ]
    params = {}
    for i, shp in enumerate(shapes, start=1):
        key, kw, kb = jax.random.split(key, 3)
        fan_in = shp[1] * shp[2] * shp[3]
        bound = 1.0 / np.sqrt(fan_in)
        params[f"w{i}"] = jax.random.uniform(kw, shp, jnp.float32, -bound, bound)
        params[f"b{i}"] = jax.random.uniform(kb, (shp[0],), jnp.float32, -bound, bound)
    return params


# -----------------------------------------------------------------------------
# Pure-JAX reference (lax conv) for correctness check.
# -----------------------------------------------------------------------------
def _conv_ref(x, w, b, *, relu):
    K = w.shape[-1]
    pad = (K - 1) // 2
    y = jax.lax.conv_general_dilated(
        x, w, window_strides=(1, 1), padding=[(pad, pad), (pad, pad)],
        dimension_numbers=("NCHW", "OIHW", "NCHW"))
    y = y + b[None, :, None, None]
    return jnp.maximum(y, 0.0) if relu else y


def net4_ref(x, params):
    h = _conv_ref(x, params["w1"], params["b1"], relu=True)
    h = _conv_ref(h, params["w2"], params["b2"], relu=True)
    h = _conv_ref(h, params["w3"], params["b3"], relu=True)
    return _conv_ref(h, params["w4"], params["b4"], relu=False)


if __name__ == "__main__":
    kernel_size = 3
    num_kernels = 4          # from num_kernels = [2, 4, 8]
    N, H, W = 2, 16, 16

    key = jax.random.PRNGKey(0)
    key, kx = jax.random.split(key)
    x = jax.random.normal(kx, (N, 1, H, W), jnp.float32)   # grayscale NCHW
    params = init_net4_params(key, kernel_size, num_kernels)

    out = jax.block_until_ready(net4_forward(x, params))
    ref = jax.block_until_ready(net4_ref(x, params))

    assert out.shape == (N, 3, H, W), out.shape
    # Tolerance covers TPU MXU default (reduced) matmul precision: the fused
    # 9-tap decomposition reorders bf16-rounded partial products relative to
    # XLA's conv; real shift/layout bugs are >=1e-2 and still caught.
    np.testing.assert_allclose(np.asarray(out), np.asarray(ref), rtol=3e-3, atol=3e-3)

    print("KERNEL_OK")
</pallas_src>

<mosaic_0001>
module attributes {stable_mosaic.version = 11 : i64} {
  func.func @kernel(%arg0: memref<4x512xf32, #tpu.memory_space<vmem>>, %arg1: memref<9x1x512xf32, #tpu.memory_space<vmem>>, %arg2: memref<9x4x4xf32, #tpu.memory_space<vmem>>, %arg3: memref<4x1xf32, #tpu.memory_space<vmem>>, %arg4: memref<9x4x4xf32, #tpu.memory_space<vmem>>, %arg5: memref<4x1xf32, #tpu.memory_space<vmem>>, %arg6: memref<9x4x4xf32, #tpu.memory_space<vmem>>, %arg7: memref<4x1xf32, #tpu.memory_space<vmem>>, %arg8: memref<9x3x4xf32, #tpu.memory_space<vmem>>, %arg9: memref<3x1xf32, #tpu.memory_space<vmem>>, %arg10: memref<3x512xf32, #tpu.memory_space<vmem>>) attributes {dimension_semantics = [], scalar_prefetch = 0 : i64, scratch_operands = 0 : i64, tpu.core_type = #tpu.core_type<tc>} {
    %c0 = arith.constant 0 : index
    %c0_0 = arith.constant 0 : index
    %0 = vector.load %arg0[%c0, %c0_0] : memref<4x512xf32, #tpu.memory_space<vmem>>, vector<4x512xf32>
    %cst = arith.constant 0.000000e+00 : f32
    %1 = vector.broadcast %cst : f32 to vector<4x512xf32>
    %c17_i32 = arith.constant 17 : i32
    %2 = tpu.dynamic_rotate %0 by %c17_i32 dim 1 : vector<4x512xf32>, i32 -> vector<4x512xf32>
    %c0_1 = arith.constant 0 : index
    %c0_2 = arith.constant 0 : index
    %c0_3 = arith.constant 0 : index
    %3 = vector.load %arg1[%c0_1, %c0_2, %c0_3] : memref<9x1x512xf32, #tpu.memory_space<vmem>>, vector<1x1x512xf32>
    %4 = vector.shape_cast %3 : vector<1x1x512xf32> to vector<1x512xf32>
    %5 = vector.broadcast %4 : vector<1x512xf32> to vector<4x512xf32>
    %6 = arith.mulf %2, %5 : vector<4x512xf32>
    %c0_4 = arith.constant 0 : index
    %c0_5 = arith.constant 0 : index
    %c0_6 = arith.constant 0 : index
    %7 = vector.load %arg2[%c0_4, %c0_5, %c0_6] : memref<9x4x4xf32, #tpu.memory_space<vmem>>, vector<1x4x4xf32>
    %8 = vector.shape_cast %7 : vector<1x4x4xf32> to vector<4x4xf32>
    %cst_7 = arith.constant dense<0.000000e+00> : vector<4x512xf32>
    %9 = tpu.matmul %8, %6, %cst_7 {dimension_numbers = #tpu.dot_dimension_numbers<[1], [0], [0], [1], [0, 0, 1, 1], [], []>} : vector<4x4xf32>, vector<4x512xf32>, vector<4x512xf32> -> vector<4x512xf32>
    %10 = arith.addf %1, %9 : vector<4x512xf32>
    %c16_i32 = arith.constant 16 : i32
    %11 = tpu.dynamic_rotate %0 by %c16_i32 dim 1 : vector<4x512xf32>, i32 -> vector<4x512xf32>
    %c1 = arith.constant 1 : index
    %c0_8 = arith.constant 0 : index
    %c0_9 = arith.constant 0 : index
    %12 = vector.load %arg1[%c1, %c0_8, %c0_9] : memref<9x1x512xf32, #tpu.memory_space<vmem>>, vector<1x1x512xf32>
    %13 = vector.shape_cast %12 : vector<1x1x512xf32> to vector<1x512xf32>
    %14 = vector.broadcast %13 : vector<1x512xf32> to vector<4x512xf32>
    %15 = arith.mulf %11, %14 : vector<4x512xf32>
    %c1_10 = arith.constant 1 : index
    %c0_11 = arith.constant 0 : index
    %c0_12 = arith.constant 0 : index
    %16 = vector.load %arg2[%c1_10, %c0_11, %c0_12] : memref<9x4x4xf32, #tpu.memory_space<vmem>>, vector<1x4x4xf32>
    %17 = vector.shape_cast %16 : vector<1x4x4xf32> to vector<4x4xf32>
    %cst_13 = arith.constant dense<0.000000e+00> : vector<4x512xf32>
    %18 = tpu.matmul %17, %15, %cst_13 {dimension_numbers = #tpu.dot_dimension_numbers<[1], [0], [0], [1], [0, 0, 1, 1], [], []>} : vector<4x4xf32>, vector<4x512xf32>, vector<4x512xf32> -> vector<4x512xf32>
    %19 = arith.addf %10, %18 : vector<4x512xf32>
    %c15_i32 = arith.constant 15 : i32
    %20 = tpu.dynamic_rotate %0 by %c15_i32 dim 1 : vector<4x512xf32>, i32 -> vector<4x512xf32>
    %c2 = arith.constant 2 : index
    %c0_14 = arith.constant 0 : index
    %c0_15 = arith.constant 0 : index
    %21 = vector.load %arg1[%c2, %c0_14, %c0_15] : memref<9x1x512xf32, #tpu.memory_space<vmem>>, vector<1x1x512xf32>
    %22 = vector.shape_cast %21 : vector<1x1x512xf32> to vector<1x512xf32>
    %23 = vector.broadcast %22 : vector<1x512xf32> to vector<4x512xf32>
    %24 = arith.mulf %20, %23 : vector<4x512xf32>
    %c2_16 = arith.constant 2 : index
    %c0_17 = arith.constant 0 : index
    %c0_18 = arith.constant 0 : index
    %25 = vector.load %arg2[%c2_16, %c0_17, %c0_18] : memref<9x4x4xf32, #tpu.memory_space<vmem>>, vector<1x4x4xf32>
    %26 = vector.shape_cast %25 : vector<1x4x4xf32> to vector<4x4xf32>
    %cst_19 = arith.constant dense<0.000000e+00> : vector<4x512xf32>
    %27 = tpu.matmul %26, %24, %cst_19 {dimension_numbers = #tpu.dot_dimension_numbers<[1], [0], [0], [1], [0, 0, 1, 1], [], []>} : vector<4x4xf32>, vector<4x512xf32>, vector<4x512xf32> -> vector<4x512xf32>
    %28 = arith.addf %19, %27 : vector<4x512xf32>
    %c1_i32 = arith.constant 1 : i32
    %29 = tpu.dynamic_rotate %0 by %c1_i32 dim 1 : vector<4x512xf32>, i32 -> vector<4x512xf32>
    %c3 = arith.constant 3 : index
    %c0_20 = arith.constant 0 : index
    %c0_21 = arith.constant 0 : index
    %30 = vector.load %arg1[%c3, %c0_20, %c0_21] : memref<9x1x512xf32, #tpu.memory_space<vmem>>, vector<1x1x512xf32>
    %31 = vector.shape_cast %30 : vector<1x1x512xf32> to vector<1x512xf32>
    %32 = vector.broadcast %31 : vector<1x512xf32> to vector<4x512xf32>
    %33 = arith.mulf %29, %32 : vector<4x512xf32>
    %c3_22 = arith.constant 3 : index
    %c0_23 = arith.constant 0 : index
    %c0_24 = arith.constant 0 : index
    %34 = vector.load %arg2[%c3_22, %c0_23, %c0_24] : memref<9x4x4xf32, #tpu.memory_space<vmem>>, vector<1x4x4xf32>
    %35 = vector.shape_cast %34 : vector<1x4x4xf32> to vector<4x4xf32>
    %cst_25 = arith.constant dense<0.000000e+00> : vector<4x512xf32>
    %36 = tpu.matmul %35, %33, %cst_25 {dimension_numbers = #tpu.dot_dimension_numbers<[1], [0], [0], [1], [0, 0, 1, 1], [], []>} : vector<4x4xf32>, vector<4x512xf32>, vector<4x512xf32> -> vector<4x512xf32>
    %37 = arith.addf %28, %36 : vector<4x512xf32>
    %c4 = arith.constant 4 : index
    %c0_26 = arith.constant 0 : index
    %c0_27 = arith.constant 0 : index
    %38 = vector.load %arg1[%c4, %c0_26, %c0_27] : memref<9x1x512xf32, #tpu.memory_space<vmem>>, vector<1x1x512xf32>
    %39 = vector.shape_cast %38 : vector<1x1x512xf32> to vector<1x512xf32>
    %40 = vector.broadcast %39 : vector<1x512xf32> to vector<4x512xf32>
    %41 = arith.mulf %0, %40 : vector<4x512xf32>
    %c4_28 = arith.constant 4 : index
    %c0_29 = arith.constant 0 : index
    %c0_30 = arith.constant 0 : index
    %42 = vector.load %arg2[%c4_28, %c0_29, %c0_30] : memref<9x4x4xf32, #tpu.memory_space<vmem>>, vector<1x4x4xf32>
    %43 = vector.shape_cast %42 : vector<1x4x4xf32> to vector<4x4xf32>
    %cst_31 = arith.constant dense<0.000000e+00> : vector<4x512xf32>
    %44 = tpu.matmul %43, %41, %cst_31 {dimension_numbers = #tpu.dot_dimension_numbers<[1], [0], [0], [1], [0, 0, 1, 1], [], []>} : vector<4x4xf32>, vector<4x512xf32>, vector<4x512xf32> -> vector<4x512xf32>
    %45 = arith.addf %37, %44 : vector<4x512xf32>
    %c511_i32 = arith.constant 511 : i32
    %46 = tpu.dynamic_rotate %0 by %c511_i32 dim 1 : vector<4x512xf32>, i32 -> vector<4x512xf32>
    %c5 = arith.constant 5 : index
    %c0_32 = arith.constant 0 : index
    %c0_33 = arith.constant 0 : index
    %47 = vector.load %arg1[%c5, %c0_32, %c0_33] : memref<9x1x512xf32, #tpu.memory_space<vmem>>, vector<1x1x512xf32>
    %48 = vector.shape_cast %47 : vector<1x1x512xf32> to vector<1x512xf32>
    %49 = vector.broadcast %48 : vector<1x512xf32> to vector<4x512xf32>
    %50 = arith.mulf %46, %49 : vector<4x512xf32>
    %c5_34 = arith.constant 5 : index
    %c0_35 = arith.constant 0 : index
    %c0_36 = arith.constant 0 : index
    %51 = vector.load %arg2[%c5_34, %c0_35, %c0_36] : memref<9x4x4xf32, #tpu.memory_space<vmem>>, vector<1x4x4xf32>
    %52 = vector.shape_cast %51 : vector<1x4x4xf32> to vector<4x4xf32>
    %cst_37 = arith.constant dense<0.000000e+00> : vector<4x512xf32>
    %53 = tpu.matmul %52, %50, %cst_37 {dimension_numbers = #tpu.dot_dimension_numbers<[1], [0], [0], [1], [0, 0, 1, 1], [], []>} : vector<4x4xf32>, vector<4x512xf32>, vector<4x512xf32> -> vector<4x512xf32>
    %54 = arith.addf %45, %53 : vector<4x512xf32>
    %c497_i32 = arith.constant 497 : i32
    %55 = tpu.dynamic_rotate %0 by %c497_i32 dim 1 : vector<4x512xf32>, i32 -> vector<4x512xf32>
    %c6 = arith.constant 6 : index
    %c0_38 = arith.constant 0 : index
    %c0_39 = arith.constant 0 : index
    %56 = vector.load %arg1[%c6, %c0_38, %c0_39] : memref<9x1x512xf32, #tpu.memory_space<vmem>>, vector<1x1x512xf32>
    %57 = vector.shape_cast %56 : vector<1x1x512xf32> to vector<1x512xf32>
    %58 = vector.broadcast %57 : vector<1x512xf32> to vector<4x512xf32>
    %59 = arith.mulf %55, %58 : vector<4x512xf32>
    %c6_40 = arith.constant 6 : index
    %c0_41 = arith.constant 0 : index
    %c0_42 = arith.constant 0 : index
    %60 = vector.load %arg2[%c6_40, %c0_41, %c0_42] : memref<9x4x4xf32, #tpu.memory_space<vmem>>, vector<1x4x4xf32>
    %61 = vector.shape_cast %60 : vector<1x4x4xf32> to vector<4x4xf32>
    %cst_43 = arith.constant dense<0.000000e+00> : vector<4x512xf32>
    %62 = tpu.matmul %61, %59, %cst_43 {dimension_numbers = #tpu.dot_dimension_numbers<[1], [0], [0], [1], [0, 0, 1, 1], [], []>} : vector<4x4xf32>, vector<4x512xf32>, vector<4x512xf32> -> vector<4x512xf32>
    %63 = arith.addf %54, %62 : vector<4x512xf32>
    %c496_i32 = arith.constant 496 : i32
    %64 = tpu.dynamic_rotate %0 by %c496_i32 dim 1 : vector<4x512xf32>, i32 -> vector<4x512xf32>
    %c7 = arith.constant 7 : index
    %c0_44 = arith.constant 0 : index
    %c0_45 = arith.constant 0 : index
    %65 = vector.load %arg1[%c7, %c0_44, %c0_45] : memref<9x1x512xf32, #tpu.memory_space<vmem>>, vector<1x1x512xf32>
    %66 = vector.shape_cast %65 : vector<1x1x512xf32> to vector<1x512xf32>
    %67 = vector.broadcast %66 : vector<1x512xf32> to vector<4x512xf32>
    %68 = arith.mulf %64, %67 : vector<4x512xf32>
    %c7_46 = arith.constant 7 : index
    %c0_47 = arith.constant 0 : index
    %c0_48 = arith.constant 0 : index
    %69 = vector.load %arg2[%c7_46, %c0_47, %c0_48] : memref<9x4x4xf32, #tpu.memory_space<vmem>>, vector<1x4x4xf32>
    %70 = vector.shape_cast %69 : vector<1x4x4xf32> to vector<4x4xf32>
    %cst_49 = arith.constant dense<0.000000e+00> : vector<4x512xf32>
    %71 = tpu.matmul %70, %68, %cst_49 {dimension_numbers = #tpu.dot_dimension_numbers<[1], [0], [0], [1], [0, 0, 1, 1], [], []>} : vector<4x4xf32>, vector<4x512xf32>, vector<4x512xf32> -> vector<4x512xf32>
    %72 = arith.addf %63, %71 : vector<4x512xf32>
    %c495_i32 = arith.constant 495 : i32
    %73 = tpu.dynamic_rotate %0 by %c495_i32 dim 1 : vector<4x512xf32>, i32 -> vector<4x512xf32>
    %c8 = arith.constant 8 : index
    %c0_50 = arith.constant 0 : index
    %c0_51 = arith.constant 0 : index
    %74 = vector.load %arg1[%c8, %c0_50, %c0_51] : memref<9x1x512xf32, #tpu.memory_space<vmem>>, vector<1x1x512xf32>
    %75 = vector.shape_cast %74 : vector<1x1x512xf32> to vector<1x512xf32>
    %76 = vector.broadcast %75 : vector<1x512xf32> to vector<4x512xf32>
    %77 = arith.mulf %73, %76 : vector<4x512xf32>
    %c8_52 = arith.constant 8 : index
    %c0_53 = arith.constant 0 : index
    %c0_54 = arith.constant 0 : index
    %78 = vector.load %arg2[%c8_52, %c0_53, %c0_54] : memref<9x4x4xf32, #tpu.memory_space<vmem>>, vector<1x4x4xf32>
    %79 = vector.shape_cast %78 : vector<1x4x4xf32> to vector<4x4xf32>
    %cst_55 = arith.constant dense<0.000000e+00> : vector<4x512xf32>
    %80 = tpu.matmul %79, %77, %cst_55 {dimension_numbers = #tpu.dot_dimension_numbers<[1], [0], [0], [1], [0, 0, 1, 1], [], []>} : vector<4x4xf32>, vector<4x512xf32>, vector<4x512xf32> -> vector<4x512xf32>
    %81 = arith.addf %72, %80 : vector<4x512xf32>
    %c0_56 = arith.constant 0 : index
    %c0_57 = arith.constant 0 : index
    %82 = vector.load %arg3[%c0_56, %c0_57] : memref<4x1xf32, #tpu.memory_space<vmem>>, vector<4x1xf32>
    %83 = vector.broadcast %82 : vector<4x1xf32> to vector<4x512xf32>
    %84 = arith.addf %81, %83 : vector<4x512xf32>
    %cst_58 = arith.constant 0.000000e+00 : f32
    %85 = vector.broadcast %cst_58 : f32 to vector<4x512xf32>
    %86 = arith.maximumf %84, %85 : vector<4x512xf32>
    %cst_59 = arith.constant 0.000000e+00 : f32
    %87 = vector.broadcast %cst_59 : f32 to vector<4x512xf32>
    %c17_i32_60 = arith.constant 17 : i32
    %88 = tpu.dynamic_rotate %86 by %c17_i32_60 dim 1 : vector<4x512xf32>, i32 -> vector<4x512xf32>
    %c0_61 = arith.constant 0 : index
    %c0_62 = arith.constant 0 : index
    %c0_63 = arith.constant 0 : index
    %89 = vector.load %arg1[%c0_61, %c0_62, %c0_63] : memref<9x1x512xf32, #tpu.memory_space<vmem>>, vector<1x1x512xf32>
    %90 = vector.shape_cast %89 : vector<1x1x512xf32> to vector<1x512xf32>
    %91 = vector.broadcast %90 : vector<1x512xf32> to vector<4x512xf32>
    %92 = arith.mulf %88, %91 : vector<4x512xf32>
    %c0_64 = arith.constant 0 : index
    %c0_65 = arith.constant 0 : index
    %c0_66 = arith.constant 0 : index
    %93 = vector.load %arg4[%c0_64, %c0_65, %c0_66] : memref<9x4x4xf32, #tpu.memory_space<vmem>>, vector<1x4x4xf32>
    %94 = vector.shape_cast %93 : vector<1x4x4xf32> to vector<4x4xf32>
    %cst_67 = arith.constant dense<0.000000e+00> : vector<4x512xf32>
    %95 = tpu.matmul %94, %92, %cst_67 {dimension_numbers = #tpu.dot_dimension_numbers<[1], [0], [0], [1], [0, 0, 1, 1], [], []>} : vector<4x4xf32>, vector<4x512xf32>, vector<4x512xf32> -> vector<4x512xf32>
    %96 = arith.addf %87, %95 : vector<4x512xf32>
    %c16_i32_68 = arith.constant 16 : i32
    %97 = tpu.dynamic_rotate %86 by %c16_i32_68 dim 1 : vector<4x512xf32>, i32 -> vector<4x512xf32>
    %c1_69 = arith.constant 1 : index
    %c0_70 = arith.constant 0 : index
    %c0_71 = arith.constant 0 : index
    %98 = vector.load %arg1[%c1_69, %c0_70, %c0_71] : memref<9x1x512xf32, #tpu.memory_space<vmem>>, vector<1x1x512xf32>
    %99 = vector.shape_cast %98 : vector<1x1x512xf32> to vector<1x512xf32>
    %100 = vector.broadcast %99 : vector<1x512xf32> to vector<4x512xf32>
    %101 = arith.mulf %97, %100 : vector<4x512xf32>
    %c1_72 = arith.constant 1 : index
    %c0_73 = arith.constant 0 : index
    %c0_74 = arith.constant 0 : index
    %102 = vector.load %arg4[%c1_72, %c0_73, %c0_74] : memref<9x4x4xf32, #tpu.memory_space<vmem>>, vector<1x4x4xf32>
    %103 = vector.shape_cast %102 : vector<1x4x4xf32> to vector<4x4xf32>
    %cst_75 = arith.constant dense<0.000000e+00> : vector<4x512xf32>
    %104 = tpu.matmul %103, %101, %cst_75 {dimension_numbers = #tpu.dot_dimension_numbers<[1], [0], [0], [1], [0, 0, 1, 1], [], []>} : vector<4x4xf32>, vector<4x512xf32>, vector<4x512xf32> -> vector<4x512xf32>
    %105 = arith.addf %96, %104 : vector<4x512xf32>
    %c15_i32_76 = arith.constant 15 : i32
    %106 = tpu.dynamic_rotate %86 by %c15_i32_76 dim 1 : vector<4x512xf32>, i32 -> vector<4x512xf32>
    %c2_77 = arith.constant 2 : index
    %c0_78 = arith.constant 0 : index
    %c0_79 = arith.constant 0 : index
    %107 = vector.load %arg1[%c2_77, %c0_78, %c0_79] : memref<9x1x512xf32, #tpu.memory_space<vmem>>, vector<1x1x512xf32>
    %108 = vector.shape_cast %107 : vector<1x1x512xf32> to vector<1x512xf32>
    %109 = vector.broadcast %108 : vector<1x512xf32> to vector<4x512xf32>
    %110 = arith.mulf %106, %109 : vector<4x512xf32>
    %c2_80 = arith.constant 2 : index
    %c0_81 = arith.constant 0 : index
    %c0_82 = arith.constant 0 : index
    %111 = vector.load %arg4[%c2_80, %c0_81, %c0_82] : memref<9x4x4xf32, #tpu.memory_space<vmem>>, vector<1x4x4xf32>
    %112 = vector.shape_cast %111 : vector<1x4x4xf32> to vector<4x4xf32>
    %cst_83 = arith.constant dense<0.000000e+00> : vector<4x512xf32>
    %113 = tpu.matmul %112, %110, %cst_83 {dimension_numbers = #tpu.dot_dimension_numbers<[1], [0], [0], [1], [0, 0, 1, 1], [], []>} : vector<4x4xf32>, vector<4x512xf32>, vector<4x512xf32> -> vector<4x512xf32>
    %114 = arith.addf %105, %113 : vector<4x512xf32>
    %c1_i32_84 = arith.constant 1 : i32
    %115 = tpu.dynamic_rotate %86 by %c1_i32_84 dim 1 : vector<4x512xf32>, i32 -> vector<4x512xf32>
    %c3_85 = arith.constant 3 : index
    %c0_86 = arith.constant 0 : index
    %c0_87 = arith.constant 0 : index
    %116 = vector.load %arg1[%c3_85, %c0_86, %c0_87] : memref<9x1x512xf32, #tpu.memory_space<vmem>>, vector<1x1x512xf32>
    %117 = vector.shape_cast %116 : vector<1x1x512xf32> to vector<1x512xf32>
    %118 = vector.broadcast %117 : vector<1x512xf32> to vector<4x512xf32>
    %119 = arith.mulf %115, %118 : vector<4x512xf32>
    %c3_88 = arith.constant 3 : index
    %c0_89 = arith.constant 0 : index
    %c0_90 = arith.constant 0 : index
    %120 = vector.load %arg4[%c3_88, %c0_89, %c0_90] : memref<9x4x4xf32, #tpu.memory_space<vmem>>, vector<1x4x4xf32>
    %121 = vector.shape_cast %120 : vector<1x4x4xf32> to vector<4x4xf32>
    %cst_91 = arith.constant dense<0.000000e+00> : vector<4x512xf32>
    %122 = tpu.matmul %121, %119, %cst_91 {dimension_numbers = #tpu.dot_dimension_numbers<[1], [0], [0], [1], [0, 0, 1, 1], [], []>} : vector<4x4xf32>, vector<4x512xf32>, vector<4x512xf32> -> vector<4x512xf32>
    %123 = arith.addf %114, %122 : vector<4x512xf32>
    %c4_92 = arith.constant 4 : index
    %c0_93 = arith.constant 0 : index
    %c0_94 = arith.constant 0 : index
    %124 = vector.load %arg1[%c4_92, %c0_93, %c0_94] : memref<9x1x512xf32, #tpu.memory_space<vmem>>, vector<1x1x512xf32>
    %125 = vector.shape_cast %124 : vector<1x1x512xf32> to vector<1x512xf32>
    %126 = vector.broadcast %125 : vector<1x512xf32> to vector<4x512xf32>
    %127 = arith.mulf %86, %126 : vector<4x512xf32>
    %c4_95 = arith.constant 4 : index
    %c0_96 = arith.constant 0 : index
    %c0_97 = arith.constant 0 : index
    %128 = vector.load %arg4[%c4_95, %c0_96, %c0_97] : memref<9x4x4xf32, #tpu.memory_space<vmem>>, vector<1x4x4xf32>
    %129 = vector.shape_cast %128 : vector<1x4x4xf32> to vector<4x4xf32>
    %cst_98 = arith.constant dense<0.000000e+00> : vector<4x512xf32>
    %130 = tpu.matmul %129, %127, %cst_98 {dimension_numbers = #tpu.dot_dimension_numbers<[1], [0], [0], [1], [0, 0, 1, 1], [], []>} : vector<4x4xf32>, vector<4x512xf32>, vector<4x512xf32> -> vector<4x512xf32>
    %131 = arith.addf %123, %130 : vector<4x512xf32>
    %c511_i32_99 = arith.constant 511 : i32
    %132 = tpu.dynamic_rotate %86 by %c511_i32_99 dim 1 : vector<4x512xf32>, i32 -> vector<4x512xf32>
    %c5_100 = arith.constant 5 : index
    %c0_101 = arith.constant 0 : index
    %c0_102 = arith.constant 0 : index
    %133 = vector.load %arg1[%c5_100, %c0_101, %c0_102] : memref<9x1x512xf32, #tpu.memory_space<vmem>>, vector<1x1x512xf32>
    %134 = vector.shape_cast %133 : vector<1x1x512xf32> to vector<1x512xf32>
    %135 = vector.broadcast %134 : vector<1x512xf32> to vector<4x512xf32>
    %136 = arith.mulf %132, %135 : vector<4x512xf32>
    %c5_103 = arith.constant 5 : index
    %c0_104 = arith.constant 0 : index
    %c0_105 = arith.constant 0 : index
    %137 = vector.load %arg4[%c5_103, %c0_104, %c0_105] : memref<9x4x4xf32, #tpu.memory_space<vmem>>, vector<1x4x4xf32>
    %138 = vector.shape_cast %137 : vector<1x4x4xf32> to vector<4x4xf32>
    %cst_106 = arith.constant dense<0.000000e+00> : vector<4x512xf32>
    %139 = tpu.matmul %138, %136, %cst_106 {dimension_numbers = #tpu.dot_dimension_numbers<[1], [0], [0], [1], [0, 0, 1, 1], [], []>} : vector<4x4xf32>, vector<4x512xf32>, vector<4x512xf32> -> vector<4x512xf32>
    %140 = arith.addf %131, %139 : vector<4x512xf32>
    %c497_i32_107 = arith.constant 497 : i32
    %141 = tpu.dynamic_rotate %86 by %c497_i32_107 dim 1 : vector<4x512xf32>, i32 -> vector<4x512xf32>
    %c6_108 = arith.constant 6 : index
    %c0_109 = arith.constant 0 : index
    %c0_110 = arith.constant 0 : index
    %142 = vector.load %arg1[%c6_108, %c0_109, %c0_110] : memref<9x1x512xf32, #tpu.memory_space<vmem>>, vector<1x1x512xf32>
    %143 = vector.shape_cast %142 : vector<1x1x512xf32> to vector<1x512xf32>
    %144 = vector.broadcast %143 : vector<1x512xf32> to vector<4x512xf32>
    %145 = arith.mulf %141, %144 : vector<4x512xf32>
    %c6_111 = arith.constant 6 : index
    %c0_112 = arith.constant 0 : index
    %c0_113 = arith.constant 0 : index
    %146 = vector.load %arg4[%c6_111, %c0_112, %c0_113] : memref<9x4x4xf32, #tpu.memory_space<vmem>>, vector<1x4x4xf32>
    %147 = vector.shape_cast %146 : vector<1x4x4xf32> to vector<4x4xf32>
    %cst_114 = arith.constant dense<0.000000e+00> : vector<4x512xf32>
    %148 = tpu.matmul %147, %145, %cst_114 {dimension_numbers = #tpu.dot_dimension_numbers<[1], [0], [0], [1], [0, 0, 1, 1], [], []>} : vector<4x4xf32>, vector<4x512xf32>, vector<4x512xf32> -> vector<4x512xf32>
    %149 = arith.addf %140, %148 : vector<4x512xf32>
    %c496_i32_115 = arith.constant 496 : i32
    %150 = tpu.dynamic_rotate %86 by %c496_i32_115 dim 1 : vector<4x512xf32>, i32 -> vector<4x512xf32>
    %c7_116 = arith.constant 7 : index
    %c0_117 = arith.constant 0 : index
    %c0_118 = arith.constant 0 : index
    %151 = vector.load %arg1[%c7_116, %c0_117, %c0_118] : memref<9x1x512xf32, #tpu.memory_space<vmem>>, vector<1x1x512xf32>
    %152 = vector.shape_cast %151 : vector<1x1x512xf32> to vector<1x512xf32>
    %153 = vector.broadcast %152 : vector<1x512xf32> to vector<4x512xf32>
    %154 = arith.mulf %150, %153 : vector<4x512xf32>
    %c7_119 = arith.constant 7 : index
    %c0_120 = arith.constant 0 : index
    %c0_121 = arith.constant 0 : index
    %155 = vector.load %arg4[%c7_119, %c0_120, %c0_121] : memref<9x4x4xf32, #tpu.memory_space<vmem>>, vector<1x4x4xf32>
    %156 = vector.shape_cast %155 : vector<1x4x4xf32> to vector<4x4xf32>
    %cst_122 = arith.constant dense<0.000000e+00> : vector<4x512xf32>
    %157 = tpu.matmul %156, %154, %cst_122 {dimension_numbers = #tpu.dot_dimension_numbers<[1], [0], [0], [1], [0, 0, 1, 1], [], []>} : vector<4x4xf32>, vector<4x512xf32>, vector<4x512xf32> -> vector<4x512xf32>
    %158 = arith.addf %149, %157 : vector<4x512xf32>
    %c495_i32_123 = arith.constant 495 : i32
    %159 = tpu.dynamic_rotate %86 by %c495_i32_123 dim 1 : vector<4x512xf32>, i32 -> vector<4x512xf32>
    %c8_124 = arith.constant 8 : index
    %c0_125 = arith.constant 0 : index
    %c0_126 = arith.constant 0 : index
    %160 = vector.load %arg1[%c8_124, %c0_125, %c0_126] : memref<9x1x512xf32, #tpu.memory_space<vmem>>, vector<1x1x512xf32>
    %161 = vector.shape_cast %160 : vector<1x1x512xf32> to vector<1x512xf32>
    %162 = vector.broadcast %161 : vector<1x512xf32> to vector<4x512xf32>
    %163 = arith.mulf %159, %162 : vector<4x512xf32>
    %c8_127 = arith.constant 8 : index
    %c0_128 = arith.constant 0 : index
    %c0_129 = arith.constant 0 : index
    %164 = vector.load %arg4[%c8_127, %c0_128, %c0_129] : memref<9x4x4xf32, #tpu.memory_space<vmem>>, vector<1x4x4xf32>
    %165 = vector.shape_cast %164 : vector<1x4x4xf32> to vector<4x4xf32>
    %cst_130 = arith.constant dense<0.000000e+00> : vector<4x512xf32>
    %166 = tpu.matmul %165, %163, %cst_130 {dimension_numbers = #tpu.dot_dimension_numbers<[1], [0], [0], [1], [0, 0, 1, 1], [], []>} : vector<4x4xf32>, vector<4x512xf32>, vector<4x512xf32> -> vector<4x512xf32>
    %167 = arith.addf %158, %166 : vector<4x512xf32>
    %c0_131 = arith.constant 0 : index
    %c0_132 = arith.constant 0 : index
    %168 = vector.load %arg5[%c0_131, %c0_132] : memref<4x1xf32, #tpu.memory_space<vmem>>, vector<4x1xf32>
    %169 = vector.broadcast %168 : vector<4x1xf32> to vector<4x512xf32>
    %170 = arith.addf %167, %169 : vector<4x512xf32>
    %cst_133 = arith.constant 0.000000e+00 : f32
    %171 = vector.broadcast %cst_133 : f32 to vector<4x512xf32>
    %172 = arith.maximumf %170, %171 : vector<4x512xf32>
    %cst_134 = arith.constant 0.000000e+00 : f32
    %173 = vector.broadcast %cst_134 : f32 to vector<4x512xf32>
    %c17_i32_135 = arith.constant 17 : i32
    %174 = tpu.dynamic_rotate %172 by %c17_i32_135 dim 1 : vector<4x512xf32>, i32 -> vector<4x512xf32>
    %c0_136 = arith.constant 0 : index
    %c0_137 = arith.constant 0 : index
    %c0_138 = arith.constant 0 : index
    %175 = vector.load %arg1[%c0_136, %c0_137, %c0_138] : memref<9x1x512xf32, #tpu.memory_space<vmem>>, vector<1x1x512xf32>
    %176 = vector.shape_cast %175 : vector<1x1x512xf32> to vector<1x512xf32>
    %177 = vector.broadcast %176 : vector<1x512xf32> to vector<4x512xf32>
    %178 = arith.mulf %174, %177 : vector<4x512xf32>
    %c0_139 = arith.constant 0 : index
    %c0_140 = arith.constant 0 : index
    %c0_141 = arith.constant 0 : index
    %179 = vector.load %arg6[%c0_139, %c0_140, %c0_141] : memref<9x4x4xf32, #tpu.memory_space<vmem>>, vector<1x4x4xf32>
    %180 = vector.shape_cast %179 : vector<1x4x4xf32> to vector<4x4xf32>
    %cst_142 = arith.constant dense<0.000000e+00> : vector<4x512xf32>
    %181 = tpu.matmul %180, %178, %cst_142 {dimension_numbers = #tpu.dot_dimension_numbers<[1], [0], [0], [1], [0, 0, 1, 1], [], []>} : vector<4x4xf32>, vector<4x512xf32>, vector<4x512xf32> -> vector<4x512xf32>
    %182 = arith.addf %173, %181 : vector<4x512xf32>
    %c16_i32_143 = arith.constant 16 : i32
    %183 = tpu.dynamic_rotate %172 by %c16_i32_143 dim 1 : vector<4x512xf32>, i32 -> vector<4x512xf32>
    %c1_144 = arith.constant 1 : index
    %c0_145 = arith.constant 0 : index
    %c0_146 = arith.constant 0 : index
    %184 = vector.load %arg1[%c1_144, %c0_145, %c0_146] : memref<9x1x512xf32, #tpu.memory_space<vmem>>, vector<1x1x512xf32>
    %185 = vector.shape_cast %184 : vector<1x1x512xf32> to vector<1x512xf32>
    %186 = vector.broadcast %185 : vector<1x512xf32> to vector<4x512xf32>
    %187 = arith.mulf %183, %186 : vector<4x512xf32>
    %c1_147 = arith.constant 1 : index
    %c0_148 = arith.constant 0 : index
    %c0_149 = arith.constant 0 : index
    %188 = vector.load %arg6[%c1_147, %c0_148, %c0_149] : memref<9x4x4xf32, #tpu.memory_space<vmem>>, vector<1x4x4xf32>
    %189 = vector.shape_cast %188 : vector<1x4x4xf32> to vector<4x4xf32>
    %cst_150 = arith.constant dense<0.000000e+00> : vector<4x512xf32>
    %190 = tpu.matmul %189, %187, %cst_150 {dimension_numbers = #tpu.dot_dimension_numbers<[1], [0], [0], [1], [0, 0, 1, 1], [], []>} : vector<4x4xf32>, vector<4x512xf32>, vector<4x512xf32> -> vector<4x512xf32>
    %191 = arith.addf %182, %190 : vector<4x512xf32>
    %c15_i32_151 = arith.constant 15 : i32
    %192 = tpu.dynamic_rotate %172 by %c15_i32_151 dim 1 : vector<4x512xf32>, i32 -> vector<4x512xf32>
    %c2_152 = arith.constant 2 : index
    %c0_153 = arith.constant 0 : index
    %c0_154 = arith.constant 0 : index
    %193 = vector.load %arg1[%c2_152, %c0_153, %c0_154] : memref<9x1x512xf32, #tpu.memory_space<vmem>>, vector<1x1x512xf32>
    %194 = vector.shape_cast %193 : vector<1x1x512xf32> to vector<1x512xf32>
    %195 = vector.broadcast %194 : vector<1x512xf32> to vector<4x512xf32>
    %196 = arith.mulf %192, %195 : vector<4x512xf32>
    %c2_155 = arith.constant 2 : index
    %c0_156 = arith.constant 0 : index
    %c0_157 = arith.constant 0 : index
    %197 = vector.load %arg6[%c2_155, %c0_156, %c0_157] : memref<9x4x4xf32, #tpu.memory_space<vmem>>, vector<1x4x4xf32>
    %198 = vector.shape_cast %197 : vector<1x4x4xf32> to vector<4x4xf32>
    %cst_158 = arith.constant dense<0.000000e+00> : vector<4x512xf32>
    %199 = tpu.matmul %198, %196, %cst_158 {dimension_numbers = #tpu.dot_dimension_numbers<[1], [0], [0], [1], [0, 0, 1, 1], [], []>} : vector<4x4xf32>, vector<4x512xf32>, vector<4x512xf32> -> vector<4x512xf32>
    %200 = arith.addf %191, %199 : vector<4x512xf32>
    %c1_i32_159 = arith.constant 1 : i32
    %201 = tpu.dynamic_rotate %172 by %c1_i32_159 dim 1 : vector<4x512xf32>, i32 -> vector<4x512xf32>
    %c3_160 = arith.constant 3 : index
    %c0_161 = arith.constant 0 : index
    %c0_162 = arith.constant 0 : index
    %202 = vector.load %arg1[%c3_160, %c0_161, %c0_162] : memref<9x1x512xf32, #tpu.memory_space<vmem>>, vector<1x1x512xf32>
    %203 = vector.shape_cast %202 : vector<1x1x512xf32> to vector<1x512xf32>
    %204 = vector.broadcast %203 : vector<1x512xf32> to vector<4x512xf32>
    %205 = arith.mulf %201, %204 : vector<4x512xf32>
    %c3_163 = arith.constant 3 : index
    %c0_164 = arith.constant 0 : index
    %c0_165 = arith.constant 0 : index
    %206 = vector.load %arg6[%c3_163, %c0_164, %c0_165] : memref<9x4x4xf32, #tpu.memory_space<vmem>>, vector<1x4x4xf32>
    %207 = vector.shape_cast %206 : vector<1x4x4xf32> to vector<4x4xf32>
    %cst_166 = arith.constant dense<0.000000e+00> : vector<4x512xf32>
    %208 = tpu.matmul %207, %205, %cst_166 {dimension_numbers = #tpu.dot_dimension_numbers<[1], [0], [0], [1], [0, 0, 1, 1], [], []>} : vector<4x4xf32>, vector<4x512xf32>, vector<4x512xf32> -> vector<4x512xf32>
    %209 = arith.addf %200, %208 : vector<4x512xf32>
    %c4_167 = arith.constant 4 : index
    %c0_168 = arith.constant 0 : index
    %c0_169 = arith.constant 0 : index
    %210 = vector.load %arg1[%c4_167, %c0_168, %c0_169] : memref<9x1x512xf32, #tpu.memory_space<vmem>>, vector<1x1x512xf32>
    %211 = vector.shape_cast %210 : vector<1x1x512xf32> to vector<1x512xf32>
    %212 = vector.broadcast %211 : vector<1x512xf32> to vector<4x512xf32>
    %213 = arith.mulf %172, %212 : vector<4x512xf32>
    %c4_170 = arith.constant 4 : index
    %c0_171 = arith.constant 0 : index
    %c0_172 = arith.constant 0 : index
    %214 = vector.load %arg6[%c4_170, %c0_171, %c0_172] : memref<9x4x4xf32, #tpu.memory_space<vmem>>, vector<1x4x4xf32>
    %215 = vector.shape_cast %214 : vector<1x4x4xf32> to vector<4x4xf32>
    %cst_173 = arith.constant dense<0.000000e+00> : vector<4x512xf32>
    %216 = tpu.matmul %215, %213, %cst_173 {dimension_numbers = #tpu.dot_dimension_numbers<[1], [0], [0], [1], [0, 0, 1, 1], [], []>} : vector<4x4xf32>, vector<4x512xf32>, vector<4x512xf32> -> vector<4x512xf32>
    %217 = arith.addf %209, %216 : vector<4x512xf32>
    %c511_i32_174 = arith.constant 511 : i32
    %218 = tpu.dynamic_rotate %172 by %c511_i32_174 dim 1 : vector<4x512xf32>, i32 -> vector<4x512xf32>
    %c5_175 = arith.constant 5 : index
    %c0_176 = arith.constant 0 : index
    %c0_177 = arith.constant 0 : index
    %219 = vector.load %arg1[%c5_175, %c0_176, %c0_177] : memref<9x1x512xf32, #tpu.memory_space<vmem>>, vector<1x1x512xf32>
    %220 = vector.shape_cast %219 : vector<1x1x512xf32> to vector<1x512xf32>
    %221 = vector.broadcast %220 : vector<1x512xf32> to vector<4x512xf32>
    %222 = arith.mulf %218, %221 : vector<4x512xf32>
    %c5_178 = arith.constant 5 : index
    %c0_179 = arith.constant 0 : index
    %c0_180 = arith.constant 0 : index
    %223 = vector.load %arg6[%c5_178, %c0_179, %c0_180] : memref<9x4x4xf32, #tpu.memory_space<vmem>>, vector<1x4x4xf32>
    %224 = vector.shape_cast %223 : vector<1x4x4xf32> to vector<4x4xf32>
    %cst_181 = arith.constant dense<0.000000e+00> : vector<4x512xf32>
    %225 = tpu.matmul %224, %222, %cst_181 {dimension_numbers = #tpu.dot_dimension_numbers<[1], [0], [0], [1], [0, 0, 1, 1], [], []>} : vector<4x4xf32>, vector<4x512xf32>, vector<4x512xf32> -> vector<4x512xf32>
    %226 = arith.addf %217, %225 : vector<4x512xf32>
    %c497_i32_182 = arith.constant 497 : i32
    %227 = tpu.dynamic_rotate %172 by %c497_i32_182 dim 1 : vector<4x512xf32>, i32 -> vector<4x512xf32>
    %c6_183 = arith.constant 6 : index
    %c0_184 = arith.constant 0 : index
    %c0_185 = arith.constant 0 : index
    %228 = vector.load %arg1[%c6_183, %c0_184, %c0_185] : memref<9x1x512xf32, #tpu.memory_space<vmem>>, vector<1x1x512xf32>
    %229 = vector.shape_cast %228 : vector<1x1x512xf32> to vector<1x512xf32>
    %230 = vector.broadcast %229 : vector<1x512xf32> to vector<4x512xf32>
    %231 = arith.mulf %227, %230 : vector<4x512xf32>
    %c6_186 = arith.constant 6 : index
    %c0_187 = arith.constant 0 : index
    %c0_188 = arith.constant 0 : index
    %232 = vector.load %arg6[%c6_186, %c0_187, %c0_188] : memref<9x4x4xf32, #tpu.memory_space<vmem>>, vector<1x4x4xf32>
    %233 = vector.shape_cast %232 : vector<1x4x4xf32> to vector<4x4xf32>
    %cst_189 = arith.constant dense<0.000000e+00> : vector<4x512xf32>
    %234 = tpu.matmul %233, %231, %cst_189 {dimension_numbers = #tpu.dot_dimension_numbers<[1], [0], [0], [1], [0, 0, 1, 1], [], []>} : vector<4x4xf32>, vector<4x512xf32>, vector<4x512xf32> -> vector<4x512xf32>
    %235 = arith.addf %226, %234 : vector<4x512xf32>
    %c496_i32_190 = arith.constant 496 : i32
    %236 = tpu.dynamic_rotate %172 by %c496_i32_190 dim 1 : vector<4x512xf32>, i32 -> vector<4x512xf32>
    %c7_191 = arith.constant 7 : index
    %c0_192 = arith.constant 0 : index
    %c0_193 = arith.constant 0 : index
    %237 = vector.load %arg1[%c7_191, %c0_192, %c0_193] : memref<9x1x512xf32, #tpu.memory_space<vmem>>, vector<1x1x512xf32>
    %238 = vector.shape_cast %237 : vector<1x1x512xf32> to vector<1x512xf32>
    %239 = vector.broadcast %238 : vector<1x512xf32> to vector<4x512xf32>
    %240 = arith.mulf %236, %239 : vector<4x512xf32>
    %c7_194 = arith.constant 7 : index
    %c0_195 = arith.constant 0 : index
    %c0_196 = arith.constant 0 : index
    %241 = vector.load %arg6[%c7_194, %c0_195, %c0_196] : memref<9x4x4xf32, #tpu.memory_space<vmem>>, vector<1x4x4xf32>
    %242 = vector.shape_cast %241 : vector<1x4x4xf32> to vector<4x4xf32>
    %cst_197 = arith.constant dense<0.000000e+00> : vector<4x512xf32>
    %243 = tpu.matmul %242, %240, %cst_197 {dimension_numbers = #tpu.dot_dimension_numbers<[1], [0], [0], [1], [0, 0, 1, 1], [], []>} : vector<4x4xf32>, vector<4x512xf32>, vector<4x512xf32> -> vector<4x512xf32>
    %244 = arith.addf %235, %243 : vector<4x512xf32>
    %c495_i32_198 = arith.constant 495 : i32
    %245 = tpu.dynamic_rotate %172 by %c495_i32_198 dim 1 : vector<4x512xf32>, i32 -> vector<4x512xf32>
    %c8_199 = arith.constant 8 : index
    %c0_200 = arith.constant 0 : index
    %c0_201 = arith.constant 0 : index
    %246 = vector.load %arg1[%c8_199, %c0_200, %c0_201] : memref<9x1x512xf32, #tpu.memory_space<vmem>>, vector<1x1x512xf32>
    %247 = vector.shape_cast %246 : vector<1x1x512xf32> to vector<1x512xf32>
    %248 = vector.broadcast %247 : vector<1x512xf32> to vector<4x512xf32>
    %249 = arith.mulf %245, %248 : vector<4x512xf32>
    %c8_202 = arith.constant 8 : index
    %c0_203 = arith.constant 0 : index
    %c0_204 = arith.constant 0 : index
    %250 = vector.load %arg6[%c8_202, %c0_203, %c0_204] : memref<9x4x4xf32, #tpu.memory_space<vmem>>, vector<1x4x4xf32>
    %251 = vector.shape_cast %250 : vector<1x4x4xf32> to vector<4x4xf32>
    %cst_205 = arith.constant dense<0.000000e+00> : vector<4x512xf32>
    %252 = tpu.matmul %251, %249, %cst_205 {dimension_numbers = #tpu.dot_dimension_numbers<[1], [0], [0], [1], [0, 0, 1, 1], [], []>} : vector<4x4xf32>, vector<4x512xf32>, vector<4x512xf32> -> vector<4x512xf32>
    %253 = arith.addf %244, %252 : vector<4x512xf32>
    %c0_206 = arith.constant 0 : index
    %c0_207 = arith.constant 0 : index
    %254 = vector.load %arg7[%c0_206, %c0_207] : memref<4x1xf32, #tpu.memory_space<vmem>>, vector<4x1xf32>
    %255 = vector.broadcast %254 : vector<4x1xf32> to vector<4x512xf32>
    %256 = arith.addf %253, %255 : vector<4x512xf32>
    %cst_208 = arith.constant 0.000000e+00 : f32
    %257 = vector.broadcast %cst_208 : f32 to vector<4x512xf32>
    %258 = arith.maximumf %256, %257 : vector<4x512xf32>
    %cst_209 = arith.constant 0.000000e+00 : f32
    %259 = vector.broadcast %cst_209 : f32 to vector<3x512xf32>
    %c17_i32_210 = arith.constant 17 : i32
    %260 = tpu.dynamic_rotate %258 by %c17_i32_210 dim 1 : vector<4x512xf32>, i32 -> vector<4x512xf32>
    %c0_211 = arith.constant 0 : index
    %c0_212 = arith.constant 0 : index
    %c0_213 = arith.constant 0 : index
    %261 = vector.load %arg1[%c0_211, %c0_212, %c0_213] : memref<9x1x512xf32, #tpu.memory_space<vmem>>, vector<1x1x512xf32>
    %262 = vector.shape_cast %261 : vector<1x1x512xf32> to vector<1x512xf32>
    %263 = vector.broadcast %262 : vector<1x512xf32> to vector<4x512xf32>
    %264 = arith.mulf %260, %263 : vector<4x512xf32>
    %c0_214 = arith.constant 0 : index
    %c0_215 = arith.constant 0 : index
    %c0_216 = arith.constant 0 : index
    %265 = vector.load %arg8[%c0_214, %c0_215, %c0_216] : memref<9x3x4xf32, #tpu.memory_space<vmem>>, vector<1x3x4xf32>
    %266 = vector.shape_cast %265 : vector<1x3x4xf32> to vector<3x4xf32>
    %cst_217 = arith.constant dense<0.000000e+00> : vector<3x512xf32>
    %267 = tpu.matmul %266, %264, %cst_217 {dimension_numbers = #tpu.dot_dimension_numbers<[1], [0], [0], [1], [0, 0, 1, 1], [], []>} : vector<3x4xf32>, vector<4x512xf32>, vector<3x512xf32> -> vector<3x512xf32>
    %268 = arith.addf %259, %267 : vector<3x512xf32>
    %c16_i32_218 = arith.constant 16 : i32
    %269 = tpu.dynamic_rotate %258 by %c16_i32_218 dim 1 : vector<4x512xf32>, i32 -> vector<4x512xf32>
    %c1_219 = arith.constant 1 : index
    %c0_220 = arith.constant 0 : index
    %c0_221 = arith.constant 0 : index
    %270 = vector.load %arg1[%c1_219, %c0_220, %c0_221] : memref<9x1x512xf32, #tpu.memory_space<vmem>>, vector<1x1x512xf32>
    %271 = vector.shape_cast %270 : vector<1x1x512xf32> to vector<1x512xf32>
    %272 = vector.broadcast %271 : vector<1x512xf32> to vector<4x512xf32>
    %273 = arith.mulf %269, %272 : vector<4x512xf32>
    %c1_222 = arith.constant 1 : index
    %c0_223 = arith.constant 0 : index
    %c0_224 = arith.constant 0 : index
    %274 = vector.load %arg8[%c1_222, %c0_223, %c0_224] : memref<9x3x4xf32, #tpu.memory_space<vmem>>, vector<1x3x4xf32>
    %275 = vector.shape_cast %274 : vector<1x3x4xf32> to vector<3x4xf32>
    %cst_225 = arith.constant dense<0.000000e+00> : vector<3x512xf32>
    %276 = tpu.matmul %275, %273, %cst_225 {dimension_numbers = #tpu.dot_dimension_numbers<[1], [0], [0], [1], [0, 0, 1, 1], [], []>} : vector<3x4xf32>, vector<4x512xf32>, vector<3x512xf32> -> vector<3x512xf32>
    %277 = arith.addf %268, %276 : vector<3x512xf32>
    %c15_i32_226 = arith.constant 15 : i32
    %278 = tpu.dynamic_rotate %258 by %c15_i32_226 dim 1 : vector<4x512xf32>, i32 -> vector<4x512xf32>
    %c2_227 = arith.constant 2 : index
    %c0_228 = arith.constant 0 : index
    %c0_229 = arith.constant 0 : index
    %279 = vector.load %arg1[%c2_227, %c0_228, %c0_229] : memref<9x1x512xf32, #tpu.memory_space<vmem>>, vector<1x1x512xf32>
    %280 = vector.shape_cast %279 : vector<1x1x512xf32> to vector<1x512xf32>
    %281 = vector.broadcast %280 : vector<1x512xf32> to vector<4x512xf32>
    %282 = arith.mulf %278, %281 : vector<4x512xf32>
    %c2_230 = arith.constant 2 : index
    %c0_231 = arith.constant 0 : index
    %c0_232 = arith.constant 0 : index
    %283 = vector.load %arg8[%c2_230, %c0_231, %c0_232] : memref<9x3x4xf32, #tpu.memory_space<vmem>>, vector<1x3x4xf32>
    %284 = vector.shape_cast %283 : vector<1x3x4xf32> to vector<3x4xf32>
    %cst_233 = arith.constant dense<0.000000e+00> : vector<3x512xf32>
    %285 = tpu.matmul %284, %282, %cst_233 {dimension_numbers = #tpu.dot_dimension_numbers<[1], [0], [0], [1], [0, 0, 1, 1], [], []>} : vector<3x4xf32>, vector<4x512xf32>, vector<3x512xf32> -> vector<3x512xf32>
    %286 = arith.addf %277, %285 : vector<3x512xf32>
    %c1_i32_234 = arith.constant 1 : i32
    %287 = tpu.dynamic_rotate %258 by %c1_i32_234 dim 1 : vector<4x512xf32>, i32 -> vector<4x512xf32>
    %c3_235 = arith.constant 3 : index
    %c0_236 = arith.constant 0 : index
    %c0_237 = arith.constant 0 : index
    %288 = vector.load %arg1[%c3_235, %c0_236, %c0_237] : memref<9x1x512xf32, #tpu.memory_space<vmem>>, vector<1x1x512xf32>
    %289 = vector.shape_cast %288 : vector<1x1x512xf32> to vector<1x512xf32>
    %290 = vector.broadcast %289 : vector<1x512xf32> to vector<4x512xf32>
    %291 = arith.mulf %287, %290 : vector<4x512xf32>
    %c3_238 = arith.constant 3 : index
    %c0_239 = arith.constant 0 : index
    %c0_240 = arith.constant 0 : index
    %292 = vector.load %arg8[%c3_238, %c0_239, %c0_240] : memref<9x3x4xf32, #tpu.memory_space<vmem>>, vector<1x3x4xf32>
    %293 = vector.shape_cast %292 : vector<1x3x4xf32> to vector<3x4xf32>
    %cst_241 = arith.constant dense<0.000000e+00> : vector<3x512xf32>
    %294 = tpu.matmul %293, %291, %cst_241 {dimension_numbers = #tpu.dot_dimension_numbers<[1], [0], [0], [1], [0, 0, 1, 1], [], []>} : vector<3x4xf32>, vector<4x512xf32>, vector<3x512xf32> -> vector<3x512xf32>
    %295 = arith.addf %286, %294 : vector<3x512xf32>
    %c4_242 = arith.constant 4 : index
    %c0_243 = arith.constant 0 : index
    %c0_244 = arith.constant 0 : index
    %296 = vector.load %arg1[%c4_242, %c0_243, %c0_244] : memref<9x1x512xf32, #tpu.memory_space<vmem>>, vector<1x1x512xf32>
    %297 = vector.shape_cast %296 : vector<1x1x512xf32> to vector<1x512xf32>
    %298 = vector.broadcast %297 : vector<1x512xf32> to vector<4x512xf32>
    %299 = arith.mulf %258, %298 : vector<4x512xf32>
    %c4_245 = arith.constant 4 : index
    %c0_246 = arith.constant 0 : index
    %c0_247 = arith.constant 0 : index
    %300 = vector.load %arg8[%c4_245, %c0_246, %c0_247] : memref<9x3x4xf32, #tpu.memory_space<vmem>>, vector<1x3x4xf32>
    %301 = vector.shape_cast %300 : vector<1x3x4xf32> to vector<3x4xf32>
    %cst_248 = arith.constant dense<0.000000e+00> : vector<3x512xf32>
    %302 = tpu.matmul %301, %299, %cst_248 {dimension_numbers = #tpu.dot_dimension_numbers<[1], [0], [0], [1], [0, 0, 1, 1], [], []>} : vector<3x4xf32>, vector<4x512xf32>, vector<3x512xf32> -> vector<3x512xf32>
    %303 = arith.addf %295, %302 : vector<3x512xf32>
    %c511_i32_249 = arith.constant 511 : i32
    %304 = tpu.dynamic_rotate %258 by %c511_i32_249 dim 1 : vector<4x512xf32>, i32 -> vector<4x512xf32>
    %c5_250 = arith.constant 5 : index
    %c0_251 = arith.constant 0 : index
    %c0_252 = arith.constant 0 : index
    %305 = vector.load %arg1[%c5_250, %c0_251, %c0_252] : memref<9x1x512xf32, #tpu.memory_space<vmem>>, vector<1x1x512xf32>
    %306 = vector.shape_cast %305 : vector<1x1x512xf32> to vector<1x512xf32>
    %307 = vector.broadcast %306 : vector<1x512xf32> to vector<4x512xf32>
    %308 = arith.mulf %304, %307 : vector<4x512xf32>
    %c5_253 = arith.constant 5 : index
    %c0_254 = arith.constant 0 : index
    %c0_255 = arith.constant 0 : index
    %309 = vector.load %arg8[%c5_253, %c0_254, %c0_255] : memref<9x3x4xf32, #tpu.memory_space<vmem>>, vector<1x3x4xf32>
    %310 = vector.shape_cast %309 : vector<1x3x4xf32> to vector<3x4xf32>
    %cst_256 = arith.constant dense<0.000000e+00> : vector<3x512xf32>
    %311 = tpu.matmul %310, %308, %cst_256 {dimension_numbers = #tpu.dot_dimension_numbers<[1], [0], [0], [1], [0, 0, 1, 1], [], []>} : vector<3x4xf32>, vector<4x512xf32>, vector<3x512xf32> -> vector<3x512xf32>
    %312 = arith.addf %303, %311 : vector<3x512xf32>
    %c497_i32_257 = arith.constant 497 : i32
    %313 = tpu.dynamic_rotate %258 by %c497_i32_257 dim 1 : vector<4x512xf32>, i32 -> vector<4x512xf32>
    %c6_258 = arith.constant 6 : index
    %c0_259 = arith.constant 0 : index
    %c0_260 = arith.constant 0 : index
    %314 = vector.load %arg1[%c6_258, %c0_259, %c0_260] : memref<9x1x512xf32, #tpu.memory_space<vmem>>, vector<1x1x512xf32>
    %315 = vector.shape_cast %314 : vector<1x1x512xf32> to vector<1x512xf32>
    %316 = vector.broadcast %315 : vector<1x512xf32> to vector<4x512xf32>
    %317 = arith.mulf %313, %316 : vector<4x512xf32>
    %c6_261 = arith.constant 6 : index
    %c0_262 = arith.constant 0 : index
    %c0_263 = arith.constant 0 : index
    %318 = vector.load %arg8[%c6_261, %c0_262, %c0_263] : memref<9x3x4xf32, #tpu.memory_space<vmem>>, vector<1x3x4xf32>
    %319 = vector.shape_cast %318 : vector<1x3x4xf32> to vector<3x4xf32>
    %cst_264 = arith.constant dense<0.000000e+00> : vector<3x512xf32>
    %320 = tpu.matmul %319, %317, %cst_264 {dimension_numbers = #tpu.dot_dimension_numbers<[1], [0], [0], [1], [0, 0, 1, 1], [], []>} : vector<3x4xf32>, vector<4x512xf32>, vector<3x512xf32> -> vector<3x512xf32>
    %321 = arith.addf %312, %320 : vector<3x512xf32>
    %c496_i32_265 = arith.constant 496 : i32
    %322 = tpu.dynamic_rotate %258 by %c496_i32_265 dim 1 : vector<4x512xf32>, i32 -> vector<4x512xf32>
    %c7_266 = arith.constant 7 : index
    %c0_267 = arith.constant 0 : index
    %c0_268 = arith.constant 0 : index
    %323 = vector.load %arg1[%c7_266, %c0_267, %c0_268] : memref<9x1x512xf32, #tpu.memory_space<vmem>>, vector<1x1x512xf32>
    %324 = vector.shape_cast %323 : vector<1x1x512xf32> to vector<1x512xf32>
    %325 = vector.broadcast %324 : vector<1x512xf32> to vector<4x512xf32>
    %326 = arith.mulf %322, %325 : vector<4x512xf32>
    %c7_269 = arith.constant 7 : index
    %c0_270 = arith.constant 0 : index
    %c0_271 = arith.constant 0 : index
    %327 = vector.load %arg8[%c7_269, %c0_270, %c0_271] : memref<9x3x4xf32, #tpu.memory_space<vmem>>, vector<1x3x4xf32>
    %328 = vector.shape_cast %327 : vector<1x3x4xf32> to vector<3x4xf32>
    %cst_272 = arith.constant dense<0.000000e+00> : vector<3x512xf32>
    %329 = tpu.matmul %328, %326, %cst_272 {dimension_numbers = #tpu.dot_dimension_numbers<[1], [0], [0], [1], [0, 0, 1, 1], [], []>} : vector<3x4xf32>, vector<4x512xf32>, vector<3x512xf32> -> vector<3x512xf32>
    %330 = arith.addf %321, %329 : vector<3x512xf32>
    %c495_i32_273 = arith.constant 495 : i32
    %331 = tpu.dynamic_rotate %258 by %c495_i32_273 dim 1 : vector<4x512xf32>, i32 -> vector<4x512xf32>
    %c8_274 = arith.constant 8 : index
    %c0_275 = arith.constant 0 : index
    %c0_276 = arith.constant 0 : index
    %332 = vector.load %arg1[%c8_274, %c0_275, %c0_276] : memref<9x1x512xf32, #tpu.memory_space<vmem>>, vector<1x1x512xf32>
    %333 = vector.shape_cast %332 : vector<1x1x512xf32> to vector<1x512xf32>
    %334 = vector.broadcast %333 : vector<1x512xf32> to vector<4x512xf32>
    %335 = arith.mulf %331, %334 : vector<4x512xf32>
    %c8_277 = arith.constant 8 : index
    %c0_278 = arith.constant 0 : index
    %c0_279 = arith.constant 0 : index
    %336 = vector.load %arg8[%c8_277, %c0_278, %c0_279] : memref<9x3x4xf32, #tpu.memory_space<vmem>>, vector<1x3x4xf32>
    %337 = vector.shape_cast %336 : vector<1x3x4xf32> to vector<3x4xf32>
    %cst_280 = arith.constant dense<0.000000e+00> : vector<3x512xf32>
    %338 = tpu.matmul %337, %335, %cst_280 {dimension_numbers = #tpu.dot_dimension_numbers<[1], [0], [0], [1], [0, 0, 1, 1], [], []>} : vector<3x4xf32>, vector<4x512xf32>, vector<3x512xf32> -> vector<3x512xf32>
    %339 = arith.addf %330, %338 : vector<3x512xf32>
    %c0_281 = arith.constant 0 : index
    %c0_282 = arith.constant 0 : index
    %340 = vector.load %arg9[%c0_281, %c0_282] : memref<3x1xf32, #tpu.memory_space<vmem>>, vector<3x1xf32>
    %341 = vector.broadcast %340 : vector<3x1xf32> to vector<3x512xf32>
    %342 = arith.addf %339, %341 : vector<3x512xf32>
    %c0_283 = arith.constant 0 : index
    %c0_284 = arith.constant 0 : index
    %343 = vector.load %arg10[%c0_283, %c0_284] : memref<3x512xf32, #tpu.memory_space<vmem>>, vector<3x512xf32>
    tpu.vector_store %arg10[%c0_283, %c0_284], %342 {strides = array<i32>} : memref<3x512xf32, #tpu.memory_space<vmem>>, vector<3x512xf32>,
    return
  }
}

</mosaic_0001>

<bundles_post_ra>
// kernel: net4_forward.1
= control target key start
LH: loop header
LB: loop body
LE: loop exit
PB: predicated region body
PF: predicated region fallthrough
CT: control target
= control target key end

     0   :  { %v7087_v2 = vmov 0.0   ;;  %s7088_s17 = smov 16   ;;  %s7090_s18 = smov 15   ;;  %v7096_v5 = vmov 0   ;;  %v51_v7 = vlaneseq  ;;  %vm131_vm1 = vcmask 1043456   ;;  %s8411_s0 = inlined_call_operand.vmem [shape: f32[4,512], index: 0, kind: input, shape index: {}]   ;;  %s8412_s3 = inlined_call_operand.vmem [shape: f32[4,1], index: 3, kind: input, shape index: {}]   ;;  %s8413_s1 = inlined_call_operand.vmem [shape: f32[9,1,512], index: 1, kind: input, shape index: {}]   ;;  %s8414_s2 = inlined_call_operand.vmem [shape: f32[9,4,4], index: 2, kind: input, shape index: {}]   ;;  %s8415_s5 = inlined_call_operand.vmem [shape: f32[4,1], index: 5, kind: input, shape index: {}]   ;;  %s8416_s4 = inlined_call_operand.vmem [shape: f32[9,4,4], index: 4, kind: input, shape index: {}]   ;;  %s8417_s7 = inlined_call_operand.vmem [shape: f32[4,1], index: 7, kind: input, shape index: {}]   ;;  %s8418_s6 = inlined_call_operand.vmem [shape: f32[9,4,4], index: 6, kind: input, shape index: {}]   ;;  %s8419_s9 = inlined_call_operand.vmem [shape: f32[3,1], index: 9, kind: input, shape index: {}]   ;;  %s8420_s8 = inlined_call_operand.vmem [shape: f32[9,3,4], index: 8, kind: input, shape index: {}]   ;;  %s8421_s10 = inlined_call_operand.vmem [shape: f32[3,512], index: 10, kind: output, shape index: {}]  }
   0x1   :  { %v7155_v0 = vld [vmem:[%s8411_s0 + $0x8] sm:$0xff]  ;;  %v7160_v1 = vld [vmem:[%s8411_s0] sm:$0xff]  ;;  %208 = vmatprep.mubr.f32.mxu0 %v7087_v2  ;;  %279 = vmatprep.mubr.f32.mxu1 %v7087_v2  ;;  %s7089_s0 = smov 17   ;;  %s7091_s19 = smov 1   ;;  %vm127_vm3 = vcmask 31744  }
   0x2   :  { %89 = vrot.lane.b32.xlu1 %v7155_v0, %s7088_s17  ;;  %85 = vrot.lane.b32.xlu0 %v7160_v1, %s7088_s17  ;;  %v40_v3 = vcombine.high %v7155_v0, %v7155_v0  ;;  %v39_v4 = vcombine.high %v7160_v1, %v7160_v1  ;;  %s7092_s20 = smov 127   ;;  %s7093_s21 = smov 113   ;;  %v1853_v6 = vld [vmem:[%s8412_s3] sm:$0xf]  ;;  %v61_v8 = vshrl.u32 %v51_v7, 7  ;;  %v7219_v9 = vand.u32 127, %v51_v7 }
   0x3   :  { %s7094_s22 = smov 112   ;;  %s7095_s23 = smov 111   ;;  %7083 = vset.pattern.permute.xlu0 %v7096_v5  ;;  %7084 = vset.pattern.permute.xlu1 %v7096_v5  ;;  %v6689_v14 = vld [vmem:[%s8413_s1 + $0x4] sm:$0xf]  ;;  %v58_v17 = vld [vmem:[%s8413_s1] sm:$0xf] }
   0x4   :  { %v7221_v10 = vsub.s32 3, %v61_v8  ;;  %v7223_v11 = vsub.s32 1, %v61_v8  ;;  %v7225_v12 = vsub.s32 0, %v61_v8  ;;  %v7227_v13 = vsub.s32 2, %v61_v8  ;;  %v6690_v33 = vld [vmem:[%s8414_s2 + $0x4] sm:$0xf] }
   0x5   :  { %vm93_vm0 = vcmp.lt.s32.totalorder %v7219_v9, 16  ;;  %vm53_vm2 = vcmp.lt.s32.totalorder %v7219_v9, 17  ;;  %v6703_v41 = vld [vmem:[%s8413_s1 + $0x8] sm:$0xf]  ;;  %vm451_vm4 = vcmp.lt.s32.totalorder %v7219_v9, 15  ;;  %vm654_vm5 = vcmp.lt.s32.totalorder %v7219_v9, 1 }
   0x6   :  { %91 = vrot.lane.b32.xlu1 %v40_v3, %s7088_s17  ;;  %87 = vrot.lane.b32.xlu0 %v39_v4, %s7088_s17  ;;  %v7237_v18 = vrot.slane %v6689_v14, %v7221_v10  ;;  %v7240_v19 = vrot.slane %v6689_v14, %v7223_v11  ;;  %v7243_v20 = vrot.slane %v6689_v14, %v7225_v12  ;;  %v6719_v51 = vld [vmem:[%s8413_s1 + $0x10] sm:$0xf]  ;;  %v84_v52 = vld [vmem:[%s8414_s2] sm:$0xf]  ;;  %vm1049_vm6 = vcmp.lt.s32.totalorder %v7219_v9, 127 }
   0x7   :  { %v7246_v21 = vrot.slane %v6689_v14, %v7227_v13  ;;  %v7250_v24 = vrot.slane %v58_v17, %v7223_v11  ;;  %v7274_v37 = vrot.slane %v58_v17, %v7225_v12  ;;  %v7280_v39 = vrot.slane %v58_v17, %v7227_v13  ;;  %v6711_v62 = vld [vmem:[%s8413_s1 + $0xc] sm:$0xf] }
   0x8   :  { %v7283_v40 = vrot.slane %v58_v17, %v7221_v10  ;;  %v7302_v50 = vrot.slane %v6703_v41, %v7223_v11  ;;  %v7316_v56 = vrot.slane %v6703_v41, %v7225_v12  ;;  %v7319_v57 = vrot.slane %v6719_v51, %v7225_v12 }
   0x9   :  { %v7322_v58 = vrot.slane %v6719_v51, %v7223_v11  ;;  %v7328_v60 = vrot.slane %v6703_v41, %v7227_v13  ;;  %v7331_v61 = vrot.slane %v6703_v41, %v7221_v10  ;;  %v7339_v63 = vrot.slane %v6719_v51, %v7227_v13 }
   0xa   :  { %45 = vrot.lane.b32.xlu1 %v39_v4, %s7089_s0  ;;  %43 = vrot.lane.b32.xlu0 %v7160_v1, %s7089_s0  ;;  %vm1252_vm7 = vcmp.lt.s32.totalorder %v7219_v9, 113  ;;  %vm1455_vm8 = vcmp.lt.s32.totalorder %v7219_v9, 112  ;;  %vm1658_vm9 = vcmp.lt.s32.totalorder %v7219_v9, 111  ;;  %v6938_v9 = vld [vmem:[%s8420_s8 + $0x20] sm:$0x7] }
   0xb   :  { %v872_v14 = vcombine.low %v7319_v57, %v7322_v58 }
   0xe   :  { %49 = vrot.lane.b32.xlu1 %v40_v3, %s7089_s0  ;;  %47 = vrot.lane.b32.xlu0 %v7155_v0, %s7089_s0 }
  0x12   :  { %445 = vrot.lane.b32.xlu1 %v39_v4, %s7090_s18  ;;  %443 = vrot.lane.b32.xlu0 %v7160_v1, %s7090_s18 }
  0x16   :  { %449 = vrot.lane.b32.xlu1 %v40_v3, %s7090_s18  ;;  %447 = vrot.lane.b32.xlu0 %v7155_v0, %s7090_s18 }
  0x1a   :  { %648 = vrot.lane.b32.xlu1 %v39_v4, %s7091_s19  ;;  %646 = vrot.lane.b32.xlu0 %v7160_v1, %s7091_s19 }
  0x1e   :  { %652 = vrot.lane.b32.xlu1 %v40_v3, %s7091_s19  ;;  %650 = vrot.lane.b32.xlu0 %v7155_v0, %s7091_s19 }
  0x22   :  { %1041 = vrot.lane.b32.xlu0 %v7160_v1, %s7092_s20  ;;  %1043 = vrot.lane.b32.xlu1 %v39_v4, %s7092_s20 }
  0x26   :  { %1045 = vrot.lane.b32.xlu0 %v7155_v0, %s7092_s20  ;;  %1047 = vrot.lane.b32.xlu1 %v40_v3, %s7092_s20 }
  0x2a   :  { %1244 = vrot.lane.b32.xlu0 %v7160_v1, %s7093_s21  ;;  %1246 = vrot.lane.b32.xlu1 %v39_v4, %s7093_s21 }
  0x2e   :  { %1248 = vrot.lane.b32.xlu0 %v7155_v0, %s7093_s21  ;;  %1250 = vrot.lane.b32.xlu1 %v40_v3, %s7093_s21 }
  0x32   :  { %1447 = vrot.lane.b32.xlu0 %v7160_v1, %s7094_s22  ;;  %1449 = vrot.lane.b32.xlu1 %v39_v4, %s7094_s22 }
  0x36   :  { %1451 = vrot.lane.b32.xlu0 %v7155_v0, %s7094_s22  ;;  %1453 = vrot.lane.b32.xlu1 %v40_v3, %s7094_s22 }
  0x3a   :  { %1650 = vrot.lane.b32.xlu0 %v7160_v1, %s7095_s23  ;;  %1652 = vrot.lane.b32.xlu1 %v39_v4, %s7095_s23 }
  0x3e   :  { %1654 = vrot.lane.b32.xlu0 %v7155_v0, %s7095_s23  ;;  %1656 = vrot.lane.b32.xlu1 %v40_v3, %s7095_s23  ;;  %v7342_v3 = vrot.slane %v6719_v51, %v7221_v10 }
  0x42   :  { %1856 = vperm.xlu0 %7083, %v1853_v6  }
  0x74   :  { %v90_v15 = vpop.permute.xlu1 %89  ;;  %v86_v16 = vpop.permute.xlu0 %85 }
  0x78   :  { %v92_v22 = vpop.permute.xlu1 %91  ;;  %v88_v23 = vpop.permute.xlu0 %87 }
  0x79   :  { %v97_v25 = vsel %vm93_vm0, %v92_v22, %v86_v16  ;;  %v95_v26 = vsel %vm93_vm0, %v88_v23, %v90_v15  ;;  %v94_v27 = vsel %vm93_vm0, %v90_v15, %v92_v22  ;;  %v96_v28 = vsel %vm93_vm0, %v86_v16, %v88_v23  ;;  %v6704_v23 = vld [vmem:[%s8414_s2 + $0x8] sm:$0xf] }
  0x7a   :  { %v124_v29 = vmul.f32 %v7237_v18, %v94_v27  ;;  %v122_v30 = vmul.f32 %v7240_v19, %v96_v28  ;;  %v121_v31 = vmul.f32 %v7243_v20, %v97_v25  ;;  %v123_v32 = vmul.f32 %v7246_v21, %v95_v26 }
  0x7b   :  { %v7358_v22 = vrot.slane %v6711_v62, %v7223_v11  ;;  %v873_v25 = vcombine.low %v7339_v63, %v7342_v3 }
  0x7c   :  { %6694 = vmatprep.subr.msk.mxu1 %vm131_vm1, %v124_v29  ;;  %v46_v34 = vpop.permute.xlu1 %45  ;;  %6691 = vmatprep.subr.msk.mxu0 %vm131_vm1, %v122_v30  ;;  %v44_v35 = vpop.permute.xlu0 %43  ;;  %v7371_v29 = vrot.slane %v6711_v62, %v7225_v12  ;;  %v876_v30 = vmul.f32 %v872_v14, %v7160_v1 }
  0x7d   :  { %v56_v36 = vsel %vm53_vm2, %v44_v35, %v46_v34  ;;  %6692 = vmatpush1.msk.msra.mxu0 %vm131_vm1, %v121_v31  ;;  %6695 = vmatpush1.msk.msra.mxu1 %vm131_vm1, %v123_v32  ;;  %v7378_v32 = vrot.slane %v6711_v62, %v7227_v13 }
  0x7e   :  { %v81_v38 = vmul.f32 %v7250_v24, %v56_v36  ;;  %6693 = vmatmul.mubr.msk.f32.vlgmr.msra.gmra.mrb[0].mxu0 %vm127_vm3, %v6690_v33  ;;  %6696 = vmatmul.mubr.msk.f32.vlgmr.msra.gmra.mrb[0].mxu1 %vm127_vm3, %v6690_v33  ;;  %v7381_v33 = vrot.slane %v6711_v62, %v7221_v10 }
  0x7f   :  { %365 = vmatprep.mubr.f32.mxu0 %v7087_v2  ;;  %436 = vmatprep.mubr.f32.mxu1 %v7087_v2 }
  0x80   :  { %v50_v42 = vpop.permute.xlu1 %49  ;;  %v48_v43 = vpop.permute.xlu0 %47  ;;  %6697 = vmatprep.subr.msk.mxu0 %vm131_vm1, %v81_v38 }
  0x81   :  { %v57_v44 = vsel %vm53_vm2, %v50_v42, %v44_v35  ;;  %v54_v45 = vsel %vm53_vm2, %v48_v43, %v50_v42  ;;  %v55_v46 = vsel %vm53_vm2, %v46_v34, %v48_v43  ;;  %v877_v34 = vmul.f32 %v873_v25, %v7155_v0 }
  0x82   :  { %v80_v47 = vmul.f32 %v7274_v37, %v57_v44  ;;  %v82_v48 = vmul.f32 %v7280_v39, %v55_v46  ;;  %v83_v49 = vmul.f32 %v7283_v40, %v54_v45  ;;  %v882_v42 = vcombine.high %v876_v30, %v876_v30  ;;  %v6712_v45 = vld [vmem:[%s8414_s2 + $0xc] sm:$0xf]  ;;  %v6727_v46 = vld [vmem:[%s8413_s1 + $0x14] sm:$0xf] }
  0x83   :  { %v7410_v51 = vrot.slane %v6727_v46, %v7223_v11 }
  0x84   :  { %v446_v53 = vpop.permute.xlu1 %445  ;;  %6698 = vmatpush1.msk.msra.mxu0 %vm131_vm1, %v80_v47  ;;  %6700 = vmatprep.subr.msk.mxu1 %vm131_vm1, %v83_v49  ;;  %v444_v54 = vpop.permute.xlu0 %443  ;;  %v883_v47 = vcombine.high %v877_v34, %v877_v34 }
  0x85   :  { %v454_v55 = vsel %vm451_vm4, %v444_v54, %v446_v53  ;;  %6701 = vmatpush1.msk.msra.mxu1 %vm131_vm1, %v82_v48 }
  0x86   :  { %v480_v59 = vmul.f32 %v7302_v50, %v454_v55  ;;  %6699 = vmatmul.mubr.msk.f32.vlgmr.msra.gmra.mrb[0].mxu0 %vm127_vm3, %v84_v52  ;;  %6702 = vmatmul.mubr.msk.f32.vlgmr.msra.gmra.mrb[0].mxu1 %vm127_vm3, %v84_v52  ;;  %v7413_v52 = vrot.slane %v6727_v46, %v7221_v10 }
  0x87   :  { %564 = vmatprep.mubr.f32.mxu0 %v7087_v2  ;;  %635 = vmatprep.mubr.f32.mxu1 %v7087_v2 }
  0x88   :  { %v450_v4 = vpop.permute.xlu1 %449  ;;  %v448_v5 = vpop.permute.xlu0 %447  ;;  %6705 = vmatprep.subr.msk.mxu0 %vm131_vm1, %v480_v59 }
  0x89   :  { %v455_v6 = vsel %vm451_vm4, %v450_v4, %v444_v54  ;;  %v452_v7 = vsel %vm451_vm4, %v448_v5, %v450_v4  ;;  %v453_v8 = vsel %vm451_vm4, %v446_v53, %v448_v5  ;;  %v7416_v53 = vrot.slane %v6727_v46, %v7225_v12 }
  0x8a   :  { %v479_v15 = vmul.f32 %v7316_v56, %v455_v6  ;;  %v481_v16 = vmul.f32 %v7328_v60, %v453_v8  ;;  %v482_v17 = vmul.f32 %v7331_v61, %v452_v7  ;;  %v7419_v54 = vrot.slane %v6727_v46, %v7227_v13 }
  0x8c   :  { %v649_v26 = vpop.permute.xlu1 %648  ;;  %6706 = vmatpush1.msk.msra.mxu0 %vm131_vm1, %v479_v15  ;;  %6708 = vmatprep.subr.msk.mxu1 %vm131_vm1, %v482_v17  ;;  %v647_v27 = vpop.permute.xlu0 %646  ;;  %v6735_v17 = vld [vmem:[%s8413_s1 + $0x18] sm:$0xf] }
  0x8d   :  { %v657_v28 = vsel %vm654_vm5, %v647_v27, %v649_v26  ;;  %6709 = vmatpush1.msk.msra.mxu1 %vm131_vm1, %v481_v16  ;;  %v6720_v16 = vld [vmem:[%s8414_s2 + $0x10] sm:$0xf] }
  0x8e   :  { %v683_v31 = vmul.f32 %v7358_v22, %v657_v28  ;;  %6707 = vmatmul.mubr.msk.f32.vlgmr.msra.gmra.mrb[0].mxu0 %vm127_vm3, %v6704_v23  ;;  %6710 = vmatmul.mubr.msk.f32.vlgmr.msra.gmra.mrb[0].mxu1 %vm127_vm3, %v6704_v23  ;;  %v7456_v28 = vrot.slane %v6735_v17, %v7225_v12 }
  0x8f   :  { %767 = vmatprep.mubr.f32.mxu0 %v7087_v2  ;;  %838 = vmatprep.mubr.f32.mxu1 %v7087_v2 }
  0x90   :  { %v653_v35 = vpop.permute.xlu1 %652  ;;  %v651_v1 = vpop.permute.xlu0 %650  ;;  %6713 = vmatprep.subr.msk.mxu0 %vm131_vm1, %v683_v31 }
  0x91   :  { %v658_v36 = vsel %vm654_vm5, %v653_v35, %v647_v27  ;;  %v655_v38 = vsel %vm654_vm5, %v651_v1, %v653_v35  ;;  %v656_v41 = vsel %vm654_vm5, %v649_v26, %v651_v1  ;;  %v7450_v26 = vrot.slane %v6735_v17, %v7223_v11 }
  0x92   :  { %v682_v43 = vmul.f32 %v7371_v29, %v658_v36  ;;  %v684_v44 = vmul.f32 %v7378_v32, %v656_v41  ;;  %v685_v0 = vmul.f32 %v7381_v33, %v655_v38  ;;  %v7453_v27 = vrot.slane %v6735_v17, %v7221_v10 }
  0x94   :  { %6714 = vmatpush1.msk.msra.mxu0 %vm131_vm1, %v682_v43  ;;  %6716 = vmatprep.subr.msk.mxu1 %vm131_vm1, %v685_v0  ;;  %v1042_v48 = vpop.permute.xlu0 %1041  ;;  %v1044_v49 = vpop.permute.xlu1 %1043  ;;  %v6728_v0 = vld [vmem:[%s8414_s2 + $0x14] sm:$0xf] }
  0x95   :  { %6717 = vmatpush1.msk.msra.mxu1 %vm131_vm1, %v684_v44  ;;  %6721 = vmatprep.subr.msk.mxu0 %vm131_vm1, %v882_v42  ;;  %v1052_v55 = vsel %vm1049_vm6, %v1042_v48, %v1044_v49 }
  0x96   :  { %6715 = vmatmul.mubr.msk.f32.vlgmr.msra.gmra.mrb[0].mxu0 %vm127_vm3, %v6712_v45  ;;  %6718 = vmatmul.mubr.msk.f32.vlgmr.msra.gmra.mrb[0].mxu1 %vm127_vm3, %v6712_v45  ;;  %v1077_v14 = vmul.f32 %v7416_v53, %v1052_v55  ;;  %v6743_v45 = vld [vmem:[%s8413_s1 + $0x1c] sm:$0xf] }
  0x97   :  { %6724 = vmatprep.subr.msk.mxu1 %vm131_vm1, %v883_v47  ;;  %6722 = vmatpush1.msk.msra.mxu0 %vm131_vm1, %v876_v30  ;;  %v7460_v30 = vrot.slane %v6735_v17, %v7227_v13  ;;  %v7495_v55 = vrot.slane %v6743_v45, %v7225_v12 }
  0x98   :  { %v1046_v59 = vpop.permute.xlu0 %1045  ;;  %v1048_v62 = vpop.permute.xlu1 %1047  ;;  %959 = vmatprep.mubr.f32.mxu0 %v7087_v2  ;;  %6725 = vmatpush1.msk.msra.mxu1 %vm131_vm1, %v877_v34 }
  0x99   :  { %v1051_v4 = vsel %vm1049_vm6, %v1044_v49, %v1046_v59  ;;  %v1050_v5 = vsel %vm1049_vm6, %v1046_v59, %v1048_v62  ;;  %v1053_v6 = vsel %vm1049_vm6, %v1048_v62, %v1042_v48  ;;  %1030 = vmatprep.mubr.f32.mxu1 %v7087_v2  ;;  %v7489_v48 = vrot.slane %v6743_v45, %v7223_v11 }
  0x9a   :  { %v1078_v7 = vmul.f32 %v7410_v51, %v1051_v4  ;;  %v1080_v8 = vmul.f32 %v7413_v52, %v1053_v6  ;;  %v1079_v15 = vmul.f32 %v7419_v54, %v1050_v5  ;;  %v7492_v49 = vrot.slane %v6743_v45, %v7221_v10 }
  0x9b   :  { %v7499_v59 = vrot.slane %v6743_v45, %v7227_v13 }
  0x9c   :  { %6729 = vmatprep.subr.msk.mxu0 %vm131_vm1, %v1078_v7  ;;  %v1245_v23 = vpop.permute.xlu0 %1244  ;;  %v1247_v25 = vpop.permute.xlu1 %1246  ;;  %6732 = vmatprep.subr.msk.mxu1 %vm131_vm1, %v1080_v8 }
  0x9d   :  { %v1255_v31 = vsel %vm1252_vm7, %v1245_v23, %v1247_v25 }
  0x9e   :  { %6723 = vmatmul.mubr.msk.f32.vlgmr.msra.gmra.mrb[0].mxu0 %vm127_vm3, %v6720_v16  ;;  %6726 = vmatmul.mubr.msk.f32.vlgmr.msra.gmra.mrb[0].mxu1 %vm127_vm3, %v6720_v16  ;;  %v1280_v43 = vmul.f32 %v7456_v28, %v1255_v31 }
  0x9f   :  { %6730 = vmatpush1.msk.msra.mxu0 %vm131_vm1, %v1077_v14  ;;  %6733 = vmatpush1.msk.msra.mxu1 %vm131_vm1, %v1079_v15 }
  0xa0   :  { %v1249_v34 = vpop.permute.xlu0 %1248  ;;  %v1251_v35 = vpop.permute.xlu1 %1250  ;;  %1162 = vmatprep.mubr.f32.mxu0 %v7087_v2  ;;  %1233 = vmatprep.mubr.f32.mxu1 %v7087_v2 }
  0xa1   :  { %v1254_v1 = vsel %vm1252_vm7, %v1247_v25, %v1249_v34  ;;  %v1253_v36 = vsel %vm1252_vm7, %v1249_v34, %v1251_v35  ;;  %v1256_v38 = vsel %vm1252_vm7, %v1251_v35, %v1245_v23  ;;  %v6736_v23 = vld [vmem:[%s8414_s2 + $0x18] sm:$0xf]  ;;  %v6751_v25 = vld [vmem:[%s8413_s1 + $0x20] sm:$0xf] }
  0xa2   :  { %v1281_v41 = vmul.f32 %v7450_v26, %v1254_v1  ;;  %v1283_v42 = vmul.f32 %v7453_v27, %v1256_v38  ;;  %v1282_v44 = vmul.f32 %v7460_v30, %v1253_v36  ;;  %v7528_v35 = vrot.slane %v6751_v25, %v7223_v11 }
  0xa3   :  { %v7531_v1 = vrot.slane %v6751_v25, %v7221_v10  ;;  %v7534_v36 = vrot.slane %v6751_v25, %v7225_v12  ;;  %v7538_v38 = vrot.slane %v6751_v25, %v7227_v13 }
  0xa4   :  { %6737 = vmatprep.subr.msk.mxu0 %vm131_vm1, %v1281_v41  ;;  %v1448_v46 = vpop.permute.xlu0 %1447  ;;  %v1450_v47 = vpop.permute.xlu1 %1449  ;;  %6740 = vmatprep.subr.msk.mxu1 %vm131_vm1, %v1283_v42 }
  0xa5   :  { %v1458_v62 = vsel %vm1455_vm8, %v1448_v46, %v1450_v47 }
  0xa6   :  { %6731 = vmatmul.mubr.msk.f32.vlgmr.msra.gmra.mrb[0].mxu0 %vm127_vm3, %v6728_v0  ;;  %6734 = vmatmul.mubr.msk.f32.vlgmr.msra.gmra.mrb[0].mxu1 %vm127_vm3, %v6728_v0  ;;  %v1483_v16 = vmul.f32 %v7495_v55, %v1458_v62 }
  0xa7   :  { %6738 = vmatpush1.msk.msra.mxu0 %vm131_vm1, %v1280_v43  ;;  %6741 = vmatpush1.msk.msra.mxu1 %vm131_vm1, %v1282_v44 }
  0xa8   :  { %v1452_v4 = vpop.permute.xlu0 %1451  ;;  %v1454_v5 = vpop.permute.xlu1 %1453  ;;  %1365 = vmatprep.mubr.f32.mxu0 %v7087_v2  ;;  %1436 = vmatprep.mubr.f32.mxu1 %v7087_v2 }
  0xa9   :  { %v1457_v6 = vsel %vm1455_vm8, %v1450_v47, %v1452_v4  ;;  %v1456_v7 = vsel %vm1455_vm8, %v1452_v4, %v1454_v5  ;;  %v1459_v8 = vsel %vm1455_vm8, %v1454_v5, %v1448_v46  ;;  %v6744_v46 = vld [vmem:[%s8414_s2 + $0x1c] sm:$0xf]  ;;  %v6752_v47 = vld [vmem:[%s8414_s2 + $0x20] sm:$0xf] }
  0xaa   :  { %v1484_v14 = vmul.f32 %v7489_v48, %v1457_v6  ;;  %v1486_v15 = vmul.f32 %v7492_v49, %v1459_v8  ;;  %v1485_v17 = vmul.f32 %v7499_v59, %v1456_v7 }
  0xac   :  { %6745 = vmatprep.subr.msk.mxu0 %vm131_vm1, %v1484_v14  ;;  %v1651_v31 = vpop.permute.xlu0 %1650  ;;  %v1653_v34 = vpop.permute.xlu1 %1652  ;;  %6748 = vmatprep.subr.msk.mxu1 %vm131_vm1, %v1486_v15 }
  0xad   :  { %v1661_v41 = vsel %vm1658_vm9, %v1651_v31, %v1653_v34 }
  0xae   :  { %6739 = vmatmul.mubr.msk.f32.vlgmr.msra.gmra.mrb[0].mxu0 %vm127_vm3, %v6736_v23  ;;  %6742 = vmatmul.mubr.msk.f32.vlgmr.msra.gmra.mrb[0].mxu1 %vm127_vm3, %v6736_v23  ;;  %v1686_v0 = vmul.f32 %v7534_v36, %v1661_v41 }
  0xaf   :  { %6746 = vmatpush1.msk.msra.mxu0 %vm131_vm1, %v1483_v16  ;;  %6749 = vmatpush1.msk.msra.mxu1 %vm131_vm1, %v1485_v17 }
  0xb0   :  { %v1655_v42 = vpop.permute.xlu0 %1654  ;;  %v1657_v43 = vpop.permute.xlu1 %1656  ;;  %1568 = vmatprep.mubr.f32.mxu0 %v7087_v2  ;;  %1639 = vmatprep.mubr.f32.mxu1 %v7087_v2 }
  0xb1   :  { %v1660_v10 = vsel %vm1658_vm9, %v1653_v34, %v1655_v42  ;;  %v1659_v11 = vsel %vm1658_vm9, %v1655_v42, %v1657_v43  ;;  %v1662_v12 = vsel %vm1658_vm9, %v1657_v43, %v1651_v31  ;;  %v3457_v34 = vld [vmem:[%s8415_s5] sm:$0xf] }
  0xb2   :  { %v1687_v13 = vmul.f32 %v7528_v35, %v1660_v10  ;;  %v1689_v44 = vmul.f32 %v7531_v1, %v1662_v12  ;;  %v1688_v45 = vmul.f32 %v7538_v38, %v1659_v11 }
  0xb4   :  { %6753 = vmatprep.subr.msk.mxu0 %vm131_vm1, %v1687_v13  ;;  %6756 = vmatprep.subr.msk.mxu1 %vm131_vm1, %v1689_v44 }
  0xb6   :  { %6747 = vmatmul.mubr.msk.f32.vlgmr.msra.gmra.mrb[0].mxu0 %vm127_vm3, %v6744_v46  ;;  %6750 = vmatmul.mubr.msk.f32.vlgmr.msra.gmra.mrb[0].mxu1 %vm127_vm3, %v6744_v46 }
  0xb7   :  { %6754 = vmatpush1.msk.msra.mxu0 %vm131_vm1, %v1686_v0  ;;  %6757 = vmatpush1.msk.msra.mxu1 %vm131_vm1, %v1688_v45 }
  0xb8   :  { %1771 = vmatprep.mubr.f32.mxu0 %v7087_v2  ;;  %1842 = vmatprep.mubr.f32.mxu1 %v7087_v2 }
  0xbe   :  { %6755 = vmatmul.mubr.msk.f32.vlgmr.msra.gmra.mrb[0].mxu0 %vm127_vm3, %v6752_v47  ;;  %6758 = vmatmul.mubr.msk.f32.vlgmr.msra.gmra.mrb[0].mxu1 %vm127_vm3, %v6752_v47 }
  0xbf   :  { %1981 = vmatprep.mubr.f32.mxu0 %v7087_v2  ;;  %2052 = vmatprep.mubr.f32.mxu1 %v7087_v2 }
  0xc1   :  { %v1857_v62 = vpop.permute.xlu0 %1856 }
 0x191   :  { %v1773_v4 = vpop.f32.mrb[0].mxu0  ;;  %v1844_v5 = vpop.f32.mrb[0].mxu1 }
 0x192   :  { %v1859_v6 = vadd.f32 %v1857_v62, %v1773_v4  ;;  %v1861_v7 = vadd.f32 %v1857_v62, %v1844_v5  ;;  %v1775_v8 = vpop.f32.mrb[1].mxu0  ;;  %v1846_v14 = vpop.f32.mrb[1].mxu1  ;;  %v6759_v4 = vld [vmem:[%s8416_s4 + $0x4] sm:$0xf] }
 0x193   :  { %v1860_v17 = vadd.f32 %v1857_v62, %v1775_v8  ;;  %v1862_v25 = vadd.f32 %v1857_v62, %v1846_v14 }
 0x194   :  { %v7573_v15 = vmax.f32 %v1859_v6, 0.0  ;;  %v7575_v16 = vmax.f32 %v1861_v7, 0.0 }
 0x195   :  { %v7581_v23 = vmax.f32 %v1860_v17, 0.0  ;;  %v7587_v31 = vmax.f32 %v1862_v25, 0.0 }
 0x196   :  { %1888 = vrot.lane.b32.xlu0 %v7575_v16, %s7088_s17  ;;  %1884 = vrot.lane.b32.xlu1 %v7573_v15, %s7088_s17 }
 0x19a   :  { %1867 = vrot.lane.b32.xlu0 %v7573_v15, %s7089_s0  ;;  %1886 = vrot.lane.b32.xlu1 %v7581_v23, %s7088_s17 }
 0x19e   :  { %1871 = vrot.lane.b32.xlu0 %v7575_v16, %s7089_s0  ;;  %1890 = vrot.lane.b32.xlu1 %v7587_v31, %s7088_s17 }
 0x1a2   :  { %2216 = vrot.lane.b32.xlu0 %v7573_v15, %s7090_s18  ;;  %1869 = vrot.lane.b32.xlu1 %v7581_v23, %s7089_s0 }
 0x1a6   :  { %2220 = vrot.lane.b32.xlu0 %v7575_v16, %s7090_s18  ;;  %1873 = vrot.lane.b32.xlu1 %v7587_v31, %s7089_s0 }
 0x1aa   :  { %2395 = vrot.lane.b32.xlu0 %v7573_v15, %s7091_s19  ;;  %2218 = vrot.lane.b32.xlu1 %v7581_v23, %s7090_s18 }
 0x1ae   :  { %2399 = vrot.lane.b32.xlu0 %v7575_v16, %s7091_s19  ;;  %2222 = vrot.lane.b32.xlu1 %v7587_v31, %s7090_s18 }
 0x1b2   :  { %2741 = vrot.lane.b32.xlu0 %v7573_v15, %s7092_s20  ;;  %2397 = vrot.lane.b32.xlu1 %v7581_v23, %s7091_s19 }
 0x1b6   :  { %2745 = vrot.lane.b32.xlu0 %v7575_v16, %s7092_s20  ;;  %2401 = vrot.lane.b32.xlu1 %v7587_v31, %s7091_s19 }
 0x1ba   :  { %2920 = vrot.lane.b32.xlu0 %v7573_v15, %s7093_s21  ;;  %2743 = vrot.lane.b32.xlu1 %v7581_v23, %s7092_s20 }
 0x1be   :  { %2924 = vrot.lane.b32.xlu0 %v7575_v16, %s7093_s21  ;;  %2747 = vrot.lane.b32.xlu1 %v7587_v31, %s7092_s20 }
 0x1c2   :  { %3099 = vrot.lane.b32.xlu0 %v7573_v15, %s7094_s22  ;;  %2922 = vrot.lane.b32.xlu1 %v7581_v23, %s7093_s21 }
 0x1c6   :  { %3103 = vrot.lane.b32.xlu0 %v7575_v16, %s7094_s22  ;;  %2926 = vrot.lane.b32.xlu1 %v7587_v31, %s7093_s21 }
 0x1ca   :  { %3278 = vrot.lane.b32.xlu0 %v7573_v15, %s7095_s23  ;;  %3101 = vrot.lane.b32.xlu1 %v7581_v23, %s7094_s22 }
 0x1ce   :  { %3282 = vrot.lane.b32.xlu0 %v7575_v16, %s7095_s23  ;;  %3105 = vrot.lane.b32.xlu1 %v7587_v31, %s7094_s22 }
 0x1d2   :  { %3460 = vperm.xlu0 %7083, %v3457_v34   ;;  %3280 = vrot.lane.b32.xlu1 %v7581_v23, %s7095_s23 }
 0x1d6   :  { %3284 = vrot.lane.b32.xlu1 %v7587_v31, %s7095_s23 }
 0x208   :  { %v1889_v41 = vpop.permute.xlu0 %1888  ;;  %v1885_v42 = vpop.permute.xlu1 %1884 }
 0x20c   :  { %v1868_v43 = vpop.permute.xlu0 %1867  ;;  %v1887_v10 = vpop.permute.xlu1 %1886 }
 0x20d   :  { %v1894_v11 = vsel %vm93_vm0, %v1885_v42, %v1887_v10  ;;  %v1893_v13 = vsel %vm93_vm0, %v1887_v10, %v1889_v41 }
 0x20e   :  { %v1897_v12 = vmul.f32 %v1894_v11, %v7240_v19  ;;  %v1898_v5 = vmul.f32 %v1893_v13, %v7246_v21 }
 0x210   :  { %v1872_v44 = vpop.permute.xlu0 %1871  ;;  %6760 = vmatprep.subr.msk.mxu0 %vm131_vm1, %v1897_v12  ;;  %v1891_v0 = vpop.permute.xlu1 %1890  ;;  %v1883_v12 = vld [vmem:[%s8416_s4] sm:$0xf] }
 0x211   :  { %v1892_v45 = vsel %vm93_vm0, %v1889_v41, %v1891_v0  ;;  %v1895_v46 = vsel %vm93_vm0, %v1891_v0, %v1885_v42 }
 0x212   :  { %v1896_v47 = vmul.f32 %v1895_v46, %v7243_v20  ;;  %v1899_v62 = vmul.f32 %v1892_v45, %v7237_v18 }
 0x214   :  { %v2217_v6 = vpop.permute.xlu0 %2216  ;;  %6761 = vmatpush1.msk.msra.mxu0 %vm131_vm1, %v1896_v47  ;;  %6763 = vmatprep.subr.msk.mxu1 %vm131_vm1, %v1899_v62  ;;  %v1870_v7 = vpop.permute.xlu1 %1869 }
 0x215   :  { %v1877_v8 = vsel %vm53_vm2, %v1868_v43, %v1870_v7  ;;  %6762 = vmatmul.mubr.msk.f32.vlgmr.msra.gmra.mrb[2].mxu0 %vm127_vm3, %v6759_v4  ;;  %6764 = vmatpush1.msk.msra.mxu1 %vm131_vm1, %v1898_v5  ;;  %v1876_v17 = vsel %vm53_vm2, %v1870_v7, %v1872_v44 }
 0x216   :  { %v1880_v14 = vmul.f32 %v1877_v8, %v7250_v24  ;;  %6765 = vmatmul.mubr.msk.f32.vlgmr.msra.gmra.mrb[2].mxu1 %vm127_vm3, %v6759_v4  ;;  %2138 = vmatprep.mubr.f32.mxu0 %v7087_v2  ;;  %v1881_v13 = vmul.f32 %v1876_v17, %v7280_v39 }
 0x217   :  { %2209 = vmatprep.mubr.f32.mxu1 %v7087_v2 }
 0x218   :  { %v2221_v25 = vpop.permute.xlu0 %2220  ;;  %6766 = vmatprep.subr.msk.mxu0 %vm131_vm1, %v1880_v14  ;;  %v1874_v34 = vpop.permute.xlu1 %1873  ;;  %v6772_v14 = vld [vmem:[%s8416_s4 + $0x8] sm:$0xf] }
 0x219   :  { %v1875_v41 = vsel %vm53_vm2, %v1872_v44, %v1874_v34  ;;  %v1878_v42 = vsel %vm53_vm2, %v1874_v34, %v1868_v43 }
 0x21a   :  { %v1879_v10 = vmul.f32 %v1878_v42, %v7274_v37  ;;  %v1882_v11 = vmul.f32 %v1875_v41, %v7283_v40 }
 0x21c   :  { %v2396_v0 = vpop.permute.xlu0 %2395  ;;  %6767 = vmatpush1.msk.msra.mxu0 %vm131_vm1, %v1879_v10  ;;  %6769 = vmatprep.subr.msk.mxu1 %vm131_vm1, %v1882_v11  ;;  %v2219_v45 = vpop.permute.xlu1 %2218 }
 0x21d   :  { %v2226_v44 = vsel %vm451_vm4, %v2217_v6, %v2219_v45  ;;  %6768 = vmatmul.mubr.msk.f32.vlgmr.msra.gmra.mrb[2].mxu0 %vm127_vm3, %v1883_v12  ;;  %6770 = vmatpush1.msk.msra.mxu1 %vm131_vm1, %v1881_v13  ;;  %v2225_v46 = vsel %vm451_vm4, %v2219_v45, %v2221_v25 }
 0x21e   :  { %v2229_v43 = vmul.f32 %v2226_v44, %v7302_v50  ;;  %6771 = vmatmul.mubr.msk.f32.vlgmr.msra.gmra.mrb[2].mxu1 %vm127_vm3, %v1883_v12  ;;  %2313 = vmatprep.mubr.f32.mxu0 %v7087_v2  ;;  %v2230_v17 = vmul.f32 %v2225_v46, %v7328_v60 }
 0x21f   :  { %2384 = vmatprep.mubr.f32.mxu1 %v7087_v2 }
 0x220   :  { %v2400_v47 = vpop.permute.xlu0 %2399  ;;  %6773 = vmatprep.subr.msk.mxu0 %vm131_vm1, %v2229_v43  ;;  %v2223_v62 = vpop.permute.xlu1 %2222  ;;  %v6779_v43 = vld [vmem:[%s8416_s4 + $0xc] sm:$0xf] }
 0x221   :  { %v2224_v4 = vsel %vm451_vm4, %v2221_v25, %v2223_v62  ;;  %v2227_v5 = vsel %vm451_vm4, %v2223_v62, %v2217_v6 }
 0x222   :  { %v2228_v7 = vmul.f32 %v2227_v5, %v7316_v56  ;;  %v2231_v8 = vmul.f32 %v2224_v4, %v7331_v61  ;;  %v2574_v5 = vmul.f32 %v7573_v15, %v7319_v57 }
 0x224   :  { %v2742_v34 = vpop.permute.xlu0 %2741  ;;  %6774 = vmatpush1.msk.msra.mxu0 %vm131_vm1, %v2228_v7  ;;  %6776 = vmatprep.subr.msk.mxu1 %vm131_vm1, %v2231_v8  ;;  %v2398_v41 = vpop.permute.xlu1 %2397  ;;  %v2577_v7 = vmul.f32 %v7587_v31, %v7342_v3 }
 0x225   :  { %v2405_v25 = vsel %vm654_vm5, %v2396_v0, %v2398_v41  ;;  %6775 = vmatmul.mubr.msk.f32.vlgmr.msra.gmra.mrb[2].mxu0 %vm127_vm3, %v6772_v14  ;;  %6777 = vmatpush1.msk.msra.mxu1 %vm131_vm1, %v2230_v17  ;;  %v2404_v42 = vsel %vm654_vm5, %v2398_v41, %v2400_v47 }
 0x226   :  { %v2408_v6 = vmul.f32 %v2405_v25, %v7358_v22  ;;  %6778 = vmatmul.mubr.msk.f32.vlgmr.msra.gmra.mrb[2].mxu1 %vm127_vm3, %v6772_v14  ;;  %2492 = vmatprep.mubr.f32.mxu0 %v7087_v2  ;;  %v2409_v46 = vmul.f32 %v2404_v42, %v7378_v32  ;;  %v6786_v25 = vld [vmem:[%s8416_s4 + $0x10] sm:$0xf] }
 0x227   :  { %2563 = vmatprep.mubr.f32.mxu1 %v7087_v2 }
 0x228   :  { %v2746_v10 = vpop.permute.xlu0 %2745  ;;  %6780 = vmatprep.subr.msk.mxu0 %vm131_vm1, %v2408_v6  ;;  %v2402_v11 = vpop.permute.xlu1 %2401 }
 0x229   :  { %v2403_v12 = vsel %vm654_vm5, %v2400_v47, %v2402_v11  ;;  %v2406_v13 = vsel %vm654_vm5, %v2402_v11, %v2396_v0  ;;  %v2575_v47 = vmul.f32 %v7581_v23, %v7322_v58  ;;  %v2576_v23 = vmul.f32 %v7575_v16, %v7339_v63 }
 0x22a   :  { %v2407_v45 = vmul.f32 %v2406_v13, %v7371_v29  ;;  %v2410_v44 = vmul.f32 %v2403_v12, %v7381_v33 }
 0x22c   :  { %v2921_v62 = vpop.permute.xlu0 %2920  ;;  %6781 = vmatpush1.msk.msra.mxu0 %vm131_vm1, %v2407_v45  ;;  %6783 = vmatprep.subr.msk.mxu1 %vm131_vm1, %v2410_v44  ;;  %v2744_v4 = vpop.permute.xlu1 %2743 }
 0x22d   :  { %v2750_v0 = vsel %vm1049_vm6, %v2744_v4, %v2746_v10  ;;  %6782 = vmatmul.mubr.msk.f32.vlgmr.msra.gmra.mrb[2].mxu0 %vm127_vm3, %v6779_v43  ;;  %6784 = vmatpush1.msk.msra.mxu1 %vm131_vm1, %v2409_v46  ;;  %v2751_v31 = vsel %vm1049_vm6, %v2742_v34, %v2744_v4 }
 0x22e   :  { %v2754_v8 = vmul.f32 %v2750_v0, %v7410_v51  ;;  %6787 = vmatprep.subr.msk.mxu0 %vm131_vm1, %v2575_v47  ;;  %6785 = vmatmul.mubr.msk.f32.vlgmr.msra.gmra.mrb[2].mxu1 %vm127_vm3, %v6779_v43  ;;  %v2753_v6 = vmul.f32 %v2751_v31, %v7416_v53  ;;  %v6793_v47 = vld [vmem:[%s8416_s4 + $0x14] sm:$0xf] }
 0x22f   :  { %6788 = vmatpush1.msk.msra.mxu0 %vm131_vm1, %v2574_v5  ;;  %6790 = vmatprep.subr.msk.mxu1 %vm131_vm1, %v2577_v7 }
 0x230   :  { %6791 = vmatpush1.msk.msra.mxu1 %vm131_vm1, %v2576_v23  ;;  %v2925_v14 = vpop.permute.xlu0 %2924  ;;  %v2748_v15 = vpop.permute.xlu1 %2747  ;;  %6794 = vmatprep.subr.msk.mxu0 %vm131_vm1, %v2754_v8 }
 0x231   :  { %v2752_v17 = vsel %vm1049_vm6, %v2748_v15, %v2742_v34  ;;  %2659 = vmatprep.mubr.f32.mxu0 %v7087_v2  ;;  %2730 = vmatprep.mubr.f32.mxu1 %v7087_v2  ;;  %v2749_v16 = vsel %vm1049_vm6, %v2746_v10, %v2748_v15 }
 0x232   :  { %v2756_v41 = vmul.f32 %v2752_v17, %v7413_v52  ;;  %v2755_v34 = vmul.f32 %v2749_v16, %v7419_v54 }
 0x234   :  { %v3100_v42 = vpop.permute.xlu0 %3099  ;;  %6797 = vmatprep.subr.msk.mxu1 %vm131_vm1, %v2756_v41  ;;  %v2923_v11 = vpop.permute.xlu1 %2922  ;;  %v6800_v41 = vld [vmem:[%s8416_s4 + $0x18] sm:$0xf] }
 0x235   :  { %v2929_v12 = vsel %vm1252_vm7, %v2923_v11, %v2925_v14  ;;  %6789 = vmatmul.mubr.msk.f32.vlgmr.msra.gmra.mrb[2].mxu0 %vm127_vm3, %v6786_v25  ;;  %v2930_v44 = vsel %vm1252_vm7, %v2921_v62, %v2923_v11 }
 0x236   :  { %v2933_v10 = vmul.f32 %v2929_v12, %v7450_v26  ;;  %6795 = vmatpush1.msk.msra.mxu0 %vm131_vm1, %v2753_v6  ;;  %6792 = vmatmul.mubr.msk.f32.vlgmr.msra.gmra.mrb[2].mxu1 %vm127_vm3, %v6786_v25  ;;  %v2932_v0 = vmul.f32 %v2930_v44, %v7456_v28 }
 0x237   :  { %6798 = vmatpush1.msk.msra.mxu1 %vm131_vm1, %v2755_v34  ;;  %2838 = vmatprep.mubr.f32.mxu0 %v7087_v2 }
 0x238   :  { %v3104_v13 = vpop.permute.xlu0 %3103  ;;  %v2927_v45 = vpop.permute.xlu1 %2926  ;;  %6801 = vmatprep.subr.msk.mxu0 %vm131_vm1, %v2933_v10  ;;  %2909 = vmatprep.mubr.f32.mxu1 %v7087_v2 }
 0x239   :  { %v2931_v43 = vsel %vm1252_vm7, %v2927_v45, %v2921_v62  ;;  %v2928_v46 = vsel %vm1252_vm7, %v2925_v14, %v2927_v45 }
 0x23a   :  { %v2935_v4 = vmul.f32 %v2931_v43, %v7453_v27  ;;  %v2934_v7 = vmul.f32 %v2928_v46, %v7460_v30  ;;  %v6807_v46 = vld [vmem:[%s8416_s4 + $0x1c] sm:$0xf] }
 0x23c   :  { %6804 = vmatprep.subr.msk.mxu1 %vm131_vm1, %v2935_v4  ;;  %v3102_v5 = vpop.permute.xlu1 %3101  ;;  %v3279_v62 = vpop.permute.xlu0 %3278 }
 0x23d   :  { %v3108_v8 = vsel %vm1455_vm8, %v3102_v5, %v3104_v13  ;;  %6796 = vmatmul.mubr.msk.f32.vlgmr.msra.gmra.mrb[2].mxu0 %vm127_vm3, %v6793_v47  ;;  %v3109_v15 = vsel %vm1455_vm8, %v3100_v42, %v3102_v5 }
 0x23e   :  { %v3112_v23 = vmul.f32 %v3108_v8, %v7489_v48  ;;  %6802 = vmatpush1.msk.msra.mxu0 %vm131_vm1, %v2932_v0  ;;  %6799 = vmatmul.mubr.msk.f32.vlgmr.msra.gmra.mrb[2].mxu1 %vm127_vm3, %v6793_v47  ;;  %v3111_v25 = vmul.f32 %v3109_v15, %v7495_v55  ;;  %v6814_v0 = vld [vmem:[%s8416_s4 + $0x20] sm:$0xf] }
 0x23f   :  { %6805 = vmatpush1.msk.msra.mxu1 %vm131_vm1, %v2934_v7  ;;  %3017 = vmatprep.mubr.f32.mxu0 %v7087_v2 }
 0x240   :  { %v3106_v14 = vpop.permute.xlu1 %3105  ;;  %6808 = vmatprep.subr.msk.mxu0 %vm131_vm1, %v3112_v23  ;;  %3088 = vmatprep.mubr.f32.mxu1 %v7087_v2  ;;  %v3283_v6 = vpop.permute.xlu0 %3282 }
 0x241   :  { %v3110_v31 = vsel %vm1455_vm8, %v3106_v14, %v3100_v42  ;;  %v3107_v17 = vsel %vm1455_vm8, %v3104_v13, %v3106_v14 }
 0x242   :  { %v3114_v16 = vmul.f32 %v3110_v31, %v7492_v49  ;;  %v3113_v34 = vmul.f32 %v3107_v17, %v7499_v59 }
 0x244   :  { %6811 = vmatprep.subr.msk.mxu1 %vm131_vm1, %v3114_v16  ;;  %v3281_v11 = vpop.permute.xlu1 %3280 }
 0x245   :  { %v3287_v42 = vsel %vm1658_vm9, %v3281_v11, %v3283_v6  ;;  %6803 = vmatmul.mubr.msk.f32.vlgmr.msra.gmra.mrb[2].mxu0 %vm127_vm3, %v6800_v41  ;;  %v3288_v13 = vsel %vm1658_vm9, %v3279_v62, %v3281_v11  ;;  %v5061_v11 = vld [vmem:[%s8417_s7] sm:$0xf] }
 0x246   :  { %v3291_v12 = vmul.f32 %v3287_v42, %v7528_v35  ;;  %6809 = vmatpush1.msk.msra.mxu0 %vm131_vm1, %v3111_v25  ;;  %6806 = vmatmul.mubr.msk.f32.vlgmr.msra.gmra.mrb[2].mxu1 %vm127_vm3, %v6800_v41  ;;  %v3290_v4 = vmul.f32 %v3288_v13, %v7534_v36 }
 0x247   :  { %6812 = vmatpush1.msk.msra.mxu1 %vm131_vm1, %v3113_v34  ;;  %3196 = vmatprep.mubr.f32.mxu0 %v7087_v2 }
 0x248   :  { %v3285_v10 = vpop.permute.xlu1 %3284  ;;  %6815 = vmatprep.subr.msk.mxu0 %vm131_vm1, %v3291_v12  ;;  %3267 = vmatprep.mubr.f32.mxu1 %v7087_v2 }
 0x249   :  { %v3289_v45 = vsel %vm1658_vm9, %v3285_v10, %v3279_v62  ;;  %v3286_v44 = vsel %vm1658_vm9, %v3283_v6, %v3285_v10 }
 0x24a   :  { %v3293_v43 = vmul.f32 %v3289_v45, %v7531_v1  ;;  %v3292_v47 = vmul.f32 %v3286_v44, %v7538_v38 }
 0x24c   :  { %6818 = vmatprep.subr.msk.mxu1 %vm131_vm1, %v3293_v43 }
 0x24d   :  { %6810 = vmatmul.mubr.msk.f32.vlgmr.msra.gmra.mrb[2].mxu0 %vm127_vm3, %v6807_v46 }
 0x24e   :  { %6816 = vmatpush1.msk.msra.mxu0 %vm131_vm1, %v3290_v4  ;;  %6813 = vmatmul.mubr.msk.f32.vlgmr.msra.gmra.mrb[2].mxu1 %vm127_vm3, %v6807_v46 }
 0x24f   :  { %6819 = vmatpush1.msk.msra.mxu1 %vm131_vm1, %v3292_v47  ;;  %3375 = vmatprep.mubr.f32.mxu0 %v7087_v2 }
 0x250   :  { %3446 = vmatprep.mubr.f32.mxu1 %v7087_v2 }
 0x251   :  { %v3461_v5 = vpop.permute.xlu0 %3460 }
 0x255   :  { %6817 = vmatmul.mubr.msk.f32.vlgmr.msra.gmra.mrb[2].mxu0 %vm127_vm3, %v6814_v0 }
 0x256   :  { %6820 = vmatmul.mubr.msk.f32.vlgmr.msra.gmra.mrb[2].mxu1 %vm127_vm3, %v6814_v0  ;;  %3585 = vmatprep.mubr.f32.mxu0 %v7087_v2  ;;  %v6821_v0 = vld [vmem:[%s8418_s6 + $0x4] sm:$0xf] }
 0x257   :  { %3656 = vmatprep.mubr.f32.mxu1 %v7087_v2 }
 0x328   :  { %v3377_v7 = vpop.f32.mrb[2].mxu0 }
 0x329   :  { %v3463_v8 = vadd.f32 %v3461_v5, %v3377_v7  ;;  %v3379_v62 = vpop.f32.mrb[3].mxu0  ;;  %v3448_v23 = vpop.f32.mrb[2].mxu1 }
 0x32a   :  { %v3464_v14 = vadd.f32 %v3461_v5, %v3379_v62  ;;  %v3450_v15 = vpop.f32.mrb[3].mxu1  ;;  %v3465_v17 = vadd.f32 %v3461_v5, %v3448_v23 }
 0x32b   :  { %v7851_v31 = vmax.f32 %v3463_v8, 0.0  ;;  %v3466_v41 = vadd.f32 %v3461_v5, %v3450_v15 }
 0x32c   :  { %v7853_v16 = vmax.f32 %v3464_v14, 0.0  ;;  %v7859_v25 = vmax.f32 %v3465_v17, 0.0 }
 0x32d   :  { %3488 = vrot.lane.b32.xlu1 %v7851_v31, %s7088_s17  ;;  %v7861_v6 = vmax.f32 %v3466_v41, 0.0 }
 0x32e   :  { %3490 = vrot.lane.b32.xlu0 %v7853_v16, %s7088_s17 }
 0x331   :  { %3492 = vrot.lane.b32.xlu1 %v7859_v25, %s7088_s17 }
 0x332   :  { %3494 = vrot.lane.b32.xlu0 %v7861_v6, %s7088_s17 }
 0x335   :  { %3471 = vrot.lane.b32.xlu1 %v7851_v31, %s7089_s0 }
 0x336   :  { %3473 = vrot.lane.b32.xlu0 %v7853_v16, %s7089_s0 }
 0x339   :  { %3475 = vrot.lane.b32.xlu1 %v7859_v25, %s7089_s0 }
 0x33a   :  { %3477 = vrot.lane.b32.xlu0 %v7861_v6, %s7089_s0 }
 0x33d   :  { %3820 = vrot.lane.b32.xlu1 %v7851_v31, %s7090_s18 }
 0x33e   :  { %3822 = vrot.lane.b32.xlu0 %v7853_v16, %s7090_s18 }
 0x341   :  { %3824 = vrot.lane.b32.xlu1 %v7859_v25, %s7090_s18 }
 0x342   :  { %3826 = vrot.lane.b32.xlu0 %v7861_v6, %s7090_s18 }
 0x345   :  { %3999 = vrot.lane.b32.xlu1 %v7851_v31, %s7091_s19 }
 0x346   :  { %4001 = vrot.lane.b32.xlu0 %v7853_v16, %s7091_s19 }
 0x349   :  { %4003 = vrot.lane.b32.xlu1 %v7859_v25, %s7091_s19 }
 0x34a   :  { %4005 = vrot.lane.b32.xlu0 %v7861_v6, %s7091_s19 }
 0x34d   :  { %4345 = vrot.lane.b32.xlu1 %v7851_v31, %s7092_s20 }
 0x34e   :  { %4347 = vrot.lane.b32.xlu0 %v7853_v16, %s7092_s20 }
 0x351   :  { %4349 = vrot.lane.b32.xlu1 %v7859_v25, %s7092_s20 }
 0x352   :  { %4351 = vrot.lane.b32.xlu0 %v7861_v6, %s7092_s20 }
 0x355   :  { %4524 = vrot.lane.b32.xlu1 %v7851_v31, %s7093_s21 }
 0x356   :  { %4526 = vrot.lane.b32.xlu0 %v7853_v16, %s7093_s21 }
 0x359   :  { %4528 = vrot.lane.b32.xlu1 %v7859_v25, %s7093_s21 }
 0x35a   :  { %4530 = vrot.lane.b32.xlu0 %v7861_v6, %s7093_s21 }
 0x35d   :  { %4703 = vrot.lane.b32.xlu1 %v7851_v31, %s7094_s22 }
 0x35e   :  { %4705 = vrot.lane.b32.xlu0 %v7853_v16, %s7094_s22 }
 0x361   :  { %4707 = vrot.lane.b32.xlu1 %v7859_v25, %s7094_s22 }
 0x362   :  { %4709 = vrot.lane.b32.xlu0 %v7861_v6, %s7094_s22 }
 0x365   :  { %4882 = vrot.lane.b32.xlu1 %v7851_v31, %s7095_s23 }
 0x366   :  { %4884 = vrot.lane.b32.xlu0 %v7853_v16, %s7095_s23 }
 0x369   :  { %4886 = vrot.lane.b32.xlu1 %v7859_v25, %s7095_s23 }
 0x36a   :  { %4888 = vrot.lane.b32.xlu0 %v7861_v6, %s7095_s23 }
 0x36d   :  { %5064 = vperm.xlu1 %7084, %v5061_v11  }
 0x39f   :  { %v3489_v34 = vpop.permute.xlu1 %3488 }
 0x3a0   :  { %v3491_v42 = vpop.permute.xlu0 %3490 }
 0x3a1   :  { %v3498_v12 = vsel %vm93_vm0, %v3489_v34, %v3491_v42 }
 0x3a2   :  { %v3501_v10 = vmul.f32 %v3498_v12, %v7240_v19  ;;  %v3487_v12 = vld [vmem:[%s8418_s6] sm:$0xf] }
 0x3a3   :  { %v3493_v13 = vpop.permute.xlu1 %3492 }
 0x3a4   :  { %v3497_v45 = vsel %vm93_vm0, %v3491_v42, %v3493_v13  ;;  %6822 = vmatprep.subr.msk.mxu0 %vm131_vm1, %v3501_v10  ;;  %v3495_v44 = vpop.permute.xlu0 %3494 }
 0x3a5   :  { %v3496_v43 = vsel %vm93_vm0, %v3493_v13, %v3495_v44  ;;  %v3499_v46 = vsel %vm93_vm0, %v3495_v44, %v3489_v34  ;;  %v3502_v5 = vmul.f32 %v3497_v45, %v7246_v21 }
 0x3a6   :  { %v3500_v4 = vmul.f32 %v3499_v46, %v7243_v20  ;;  %v3503_v47 = vmul.f32 %v3496_v43, %v7237_v18 }
 0x3a7   :  { %v3472_v7 = vpop.permute.xlu1 %3471 }
 0x3a8   :  { %6823 = vmatpush1.msk.msra.mxu0 %vm131_vm1, %v3500_v4  ;;  %6825 = vmatprep.subr.msk.mxu1 %vm131_vm1, %v3503_v47  ;;  %v3474_v8 = vpop.permute.xlu0 %3473 }
 0x3a9   :  { %v3481_v62 = vsel %vm53_vm2, %v3472_v7, %v3474_v8  ;;  %6824 = vmatmul.mubr.msk.f32.vlgmr.msra.gmra.mrb[4].mxu0 %vm127_vm3, %v6821_v0  ;;  %6826 = vmatpush1.msk.msra.mxu1 %vm131_vm1, %v3502_v5 }
 0x3aa   :  { %v3484_v23 = vmul.f32 %v3481_v62, %v7250_v24  ;;  %6827 = vmatmul.mubr.msk.f32.vlgmr.msra.gmra.mrb[4].mxu1 %vm127_vm3, %v6821_v0  ;;  %3742 = vmatprep.mubr.f32.mxu0 %v7087_v2  ;;  %v6834_v62 = vld [vmem:[%s8418_s6 + $0x8] sm:$0xf] }
 0x3ab   :  { %v3476_v14 = vpop.permute.xlu1 %3475  ;;  %3813 = vmatprep.mubr.f32.mxu1 %v7087_v2 }
 0x3ac   :  { %v3480_v15 = vsel %vm53_vm2, %v3474_v8, %v3476_v14  ;;  %6828 = vmatprep.subr.msk.mxu0 %vm131_vm1, %v3484_v23  ;;  %v3478_v17 = vpop.permute.xlu0 %3477 }
 0x3ad   :  { %v3479_v41 = vsel %vm53_vm2, %v3476_v14, %v3478_v17  ;;  %v3482_v11 = vsel %vm53_vm2, %v3478_v17, %v3472_v7  ;;  %v3485_v10 = vmul.f32 %v3480_v15, %v7280_v39 }
 0x3ae   :  { %v3483_v34 = vmul.f32 %v3482_v11, %v7274_v37  ;;  %v3486_v42 = vmul.f32 %v3479_v41, %v7283_v40 }
 0x3af   :  { %v3821_v13 = vpop.permute.xlu1 %3820 }
 0x3b0   :  { %6829 = vmatpush1.msk.msra.mxu0 %vm131_vm1, %v3483_v34  ;;  %6831 = vmatprep.subr.msk.mxu1 %vm131_vm1, %v3486_v42  ;;  %v3823_v45 = vpop.permute.xlu0 %3822 }
 0x3b1   :  { %v3830_v44 = vsel %vm451_vm4, %v3821_v13, %v3823_v45  ;;  %6830 = vmatmul.mubr.msk.f32.vlgmr.msra.gmra.mrb[4].mxu0 %vm127_vm3, %v3487_v12  ;;  %6832 = vmatpush1.msk.msra.mxu1 %vm131_vm1, %v3485_v10 }
 0x3b2   :  { %v3833_v43 = vmul.f32 %v3830_v44, %v7302_v50  ;;  %6833 = vmatmul.mubr.msk.f32.vlgmr.msra.gmra.mrb[4].mxu1 %vm127_vm3, %v3487_v12  ;;  %3917 = vmatprep.mubr.f32.mxu0 %v7087_v2  ;;  %v6841_v44 = vld [vmem:[%s8418_s6 + $0xc] sm:$0xf] }
 0x3b3   :  { %v3825_v46 = vpop.permute.xlu1 %3824  ;;  %3988 = vmatprep.mubr.f32.mxu1 %v7087_v2 }
 0x3b4   :  { %v3829_v4 = vsel %vm451_vm4, %v3823_v45, %v3825_v46  ;;  %6835 = vmatprep.subr.msk.mxu0 %vm131_vm1, %v3833_v43  ;;  %v3827_v47 = vpop.permute.xlu0 %3826 }
 0x3b5   :  { %v3828_v0 = vsel %vm451_vm4, %v3825_v46, %v3827_v47  ;;  %v3831_v5 = vsel %vm451_vm4, %v3827_v47, %v3821_v13  ;;  %v3834_v23 = vmul.f32 %v3829_v4, %v7328_v60  ;;  %v4179_v47 = vmul.f32 %v7853_v16, %v7322_v58 }
 0x3b6   :  { %v3832_v7 = vmul.f32 %v3831_v5, %v7316_v56  ;;  %v3835_v8 = vmul.f32 %v3828_v0, %v7331_v61  ;;  %v4178_v0 = vmul.f32 %v7851_v31, %v7319_v57  ;;  %v4181_v5 = vmul.f32 %v7861_v6, %v7342_v3 }
 0x3b7   :  { %v4000_v14 = vpop.permute.xlu1 %3999 }
 0x3b8   :  { %6836 = vmatpush1.msk.msra.mxu0 %vm131_vm1, %v3832_v7  ;;  %6838 = vmatprep.subr.msk.mxu1 %vm131_vm1, %v3835_v8  ;;  %v4002_v15 = vpop.permute.xlu0 %4001  ;;  %v4180_v7 = vmul.f32 %v7859_v25, %v7339_v63 }
 0x3b9   :  { %v4009_v17 = vsel %vm654_vm5, %v4000_v14, %v4002_v15  ;;  %6837 = vmatmul.mubr.msk.f32.vlgmr.msra.gmra.mrb[4].mxu0 %vm127_vm3, %v6834_v62  ;;  %6839 = vmatpush1.msk.msra.mxu1 %vm131_vm1, %v3834_v23 }
 0x3ba   :  { %v4012_v41 = vmul.f32 %v4009_v17, %v7358_v22  ;;  %6840 = vmatmul.mubr.msk.f32.vlgmr.msra.gmra.mrb[4].mxu1 %vm127_vm3, %v6834_v62  ;;  %4096 = vmatprep.mubr.f32.mxu0 %v7087_v2 }
 0x3bb   :  { %v4004_v11 = vpop.permute.xlu1 %4003  ;;  %4167 = vmatprep.mubr.f32.mxu1 %v7087_v2 }
 0x3bc   :  { %v4008_v34 = vsel %vm654_vm5, %v4002_v15, %v4004_v11  ;;  %6842 = vmatprep.subr.msk.mxu0 %vm131_vm1, %v4012_v41  ;;  %v4006_v42 = vpop.permute.xlu0 %4005  ;;  %v6848_v15 = vld [vmem:[%s8418_s6 + $0x10] sm:$0xf] }
 0x3bd   :  { %v4007_v12 = vsel %vm654_vm5, %v4004_v11, %v4006_v42  ;;  %v4010_v10 = vsel %vm654_vm5, %v4006_v42, %v4000_v14  ;;  %v4013_v43 = vmul.f32 %v4008_v34, %v7378_v32 }
 0x3be   :  { %v4011_v13 = vmul.f32 %v4010_v10, %v7371_v29  ;;  %v4014_v45 = vmul.f32 %v4007_v12, %v7381_v33 }
 0x3bf   :  { %v4346_v46 = vpop.permute.xlu1 %4345 }
 0x3c0   :  { %6843 = vmatpush1.msk.msra.mxu0 %vm131_vm1, %v4011_v13  ;;  %6845 = vmatprep.subr.msk.mxu1 %vm131_vm1, %v4014_v45  ;;  %v4348_v4 = vpop.permute.xlu0 %4347 }
 0x3c1   :  { %6844 = vmatmul.mubr.msk.f32.vlgmr.msra.gmra.mrb[4].mxu0 %vm127_vm3, %v6841_v44  ;;  %6846 = vmatpush1.msk.msra.mxu1 %vm131_vm1, %v4013_v43  ;;  %v4355_v6 = vsel %vm1049_vm6, %v4346_v46, %v4348_v4 }
 0x3c2   :  { %6849 = vmatprep.subr.msk.mxu0 %vm131_vm1, %v4179_v47  ;;  %6847 = vmatmul.mubr.msk.f32.vlgmr.msra.gmra.mrb[4].mxu1 %vm127_vm3, %v6841_v44  ;;  %v4357_v41 = vmul.f32 %v4355_v6, %v7416_v53 }
 0x3c3   :  { %6850 = vmatpush1.msk.msra.mxu0 %vm131_vm1, %v4178_v0  ;;  %6852 = vmatprep.subr.msk.mxu1 %vm131_vm1, %v4181_v5  ;;  %v4350_v16 = vpop.permute.xlu1 %4349 }
 0x3c4   :  { %v4354_v8 = vsel %vm1049_vm6, %v4348_v4, %v4350_v16  ;;  %6853 = vmatpush1.msk.msra.mxu1 %vm131_vm1, %v4180_v7  ;;  %v4352_v31 = vpop.permute.xlu0 %4351  ;;  %4263 = vmatprep.mubr.f32.mxu0 %v7087_v2  ;;  %v6855_v4 = vld [vmem:[%s8418_s6 + $0x14] sm:$0xf] }
 0x3c5   :  { %v4358_v62 = vmul.f32 %v4354_v8, %v7410_v51  ;;  %v4356_v25 = vsel %vm1049_vm6, %v4352_v31, %v4346_v46  ;;  %4334 = vmatprep.mubr.f32.mxu1 %v7087_v2  ;;  %v4353_v23 = vsel %vm1049_vm6, %v4350_v16, %v4352_v31 }
 0x3c6   :  { %v4360_v14 = vmul.f32 %v4356_v25, %v7413_v52  ;;  %v4359_v34 = vmul.f32 %v4353_v23, %v7419_v54 }
 0x3c7   :  { %v4525_v17 = vpop.permute.xlu1 %4524  ;;  %6856 = vmatprep.subr.msk.mxu0 %vm131_vm1, %v4358_v62 }
 0x3c8   :  { %6859 = vmatprep.subr.msk.mxu1 %vm131_vm1, %v4360_v14  ;;  %v4527_v11 = vpop.permute.xlu0 %4526 }
 0x3c9   :  { %6851 = vmatmul.mubr.msk.f32.vlgmr.msra.gmra.mrb[4].mxu0 %vm127_vm3, %v6848_v15  ;;  %v4534_v13 = vsel %vm1252_vm7, %v4525_v17, %v4527_v11 }
 0x3ca   :  { %6857 = vmatpush1.msk.msra.mxu0 %vm131_vm1, %v4357_v41  ;;  %6854 = vmatmul.mubr.msk.f32.vlgmr.msra.gmra.mrb[4].mxu1 %vm127_vm3, %v6848_v15  ;;  %v4536_v0 = vmul.f32 %v4534_v13, %v7456_v28  ;;  %v6862_v15 = vld [vmem:[%s8418_s6 + $0x18] sm:$0xf] }
 0x3cb   :  { %6860 = vmatpush1.msk.msra.mxu1 %vm131_vm1, %v4359_v34  ;;  %v4529_v42 = vpop.permute.xlu1 %4528  ;;  %4442 = vmatprep.mubr.f32.mxu0 %v7087_v2 }
 0x3cc   :  { %v4533_v12 = vsel %vm1252_vm7, %v4527_v11, %v4529_v42  ;;  %v4531_v10 = vpop.permute.xlu0 %4530  ;;  %4513 = vmatprep.mubr.f32.mxu1 %v7087_v2 }
 0x3cd   :  { %v4537_v45 = vmul.f32 %v4533_v12, %v7450_v26  ;;  %v4535_v44 = vsel %vm1252_vm7, %v4531_v10, %v4525_v17  ;;  %v4532_v43 = vsel %vm1252_vm7, %v4529_v42, %v4531_v10 }
 0x3ce   :  { %v4539_v46 = vmul.f32 %v4535_v44, %v7453_v27  ;;  %v4538_v7 = vmul.f32 %v4532_v43, %v7460_v30 }
 0x3cf   :  { %v4704_v47 = vpop.permute.xlu1 %4703  ;;  %6863 = vmatprep.subr.msk.mxu0 %vm131_vm1, %v4537_v45 }
 0x3d0   :  { %6866 = vmatprep.subr.msk.mxu1 %vm131_vm1, %v4539_v46  ;;  %v4706_v5 = vpop.permute.xlu0 %4705 }
 0x3d1   :  { %6858 = vmatmul.mubr.msk.f32.vlgmr.msra.gmra.mrb[4].mxu0 %vm127_vm3, %v6855_v4  ;;  %v4713_v6 = vsel %vm1455_vm8, %v4704_v47, %v4706_v5 }
 0x3d2   :  { %6864 = vmatpush1.msk.msra.mxu0 %vm131_vm1, %v4536_v0  ;;  %6861 = vmatmul.mubr.msk.f32.vlgmr.msra.gmra.mrb[4].mxu1 %vm127_vm3, %v6855_v4  ;;  %v4715_v41 = vmul.f32 %v4713_v6, %v7495_v55  ;;  %v6869_v4 = vld [vmem:[%s8418_s6 + $0x1c] sm:$0xf] }
 0x3d3   :  { %6867 = vmatpush1.msk.msra.mxu1 %vm131_vm1, %v4538_v7  ;;  %v4708_v16 = vpop.permute.xlu1 %4707  ;;  %4621 = vmatprep.mubr.f32.mxu0 %v7087_v2 }
 0x3d4   :  { %v4712_v8 = vsel %vm1455_vm8, %v4706_v5, %v4708_v16  ;;  %v4710_v31 = vpop.permute.xlu0 %4709  ;;  %4692 = vmatprep.mubr.f32.mxu1 %v7087_v2  ;;  %v6876_v5 = vld [vmem:[%s8418_s6 + $0x20] sm:$0xf] }
 0x3d5   :  { %v4716_v62 = vmul.f32 %v4712_v8, %v7489_v48  ;;  %v4714_v25 = vsel %vm1455_vm8, %v4710_v31, %v4704_v47  ;;  %v4711_v23 = vsel %vm1455_vm8, %v4708_v16, %v4710_v31 }
 0x3d6   :  { %v4718_v14 = vmul.f32 %v4714_v25, %v7492_v49  ;;  %v4717_v34 = vmul.f32 %v4711_v23, %v7499_v59 }
 0x3d7   :  { %v4883_v17 = vpop.permute.xlu1 %4882  ;;  %6870 = vmatprep.subr.msk.mxu0 %vm131_vm1, %v4716_v62 }
 0x3d8   :  { %6873 = vmatprep.subr.msk.mxu1 %vm131_vm1, %v4718_v14  ;;  %v4885_v11 = vpop.permute.xlu0 %4884 }
 0x3d9   :  { %6865 = vmatmul.mubr.msk.f32.vlgmr.msra.gmra.mrb[4].mxu0 %vm127_vm3, %v6862_v15  ;;  %v4892_v13 = vsel %vm1658_vm9, %v4883_v17, %v4885_v11 }
 0x3da   :  { %6871 = vmatpush1.msk.msra.mxu0 %vm131_vm1, %v4715_v41  ;;  %6868 = vmatmul.mubr.msk.f32.vlgmr.msra.gmra.mrb[4].mxu1 %vm127_vm3, %v6862_v15  ;;  %v4894_v47 = vmul.f32 %v4892_v13, %v7534_v36 }
 0x3db   :  { %6874 = vmatpush1.msk.msra.mxu1 %vm131_vm1, %v4717_v34  ;;  %v4887_v42 = vpop.permute.xlu1 %4886  ;;  %4800 = vmatprep.mubr.f32.mxu0 %v7087_v2  ;;  %v6665_v34 = vld [vmem:[%s8419_s9] sm:$0x7] }
 0x3dc   :  { %v4891_v12 = vsel %vm1658_vm9, %v4885_v11, %v4887_v42  ;;  %v4889_v10 = vpop.permute.xlu0 %4888  ;;  %4871 = vmatprep.mubr.f32.mxu1 %v7087_v2 }
 0x3dd   :  { %v4895_v45 = vmul.f32 %v4891_v12, %v7528_v35  ;;  %v4893_v44 = vsel %vm1658_vm9, %v4889_v10, %v4883_v17  ;;  %v4890_v43 = vsel %vm1658_vm9, %v4887_v42, %v4889_v10 }
 0x3de   :  { %v4897_v46 = vmul.f32 %v4893_v44, %v7531_v1  ;;  %v4896_v0 = vmul.f32 %v4890_v43, %v7538_v38 }
 0x3df   :  { %6877 = vmatprep.subr.msk.mxu0 %vm131_vm1, %v4895_v45 }
 0x3e0   :  { %6880 = vmatprep.subr.msk.mxu1 %vm131_vm1, %v4897_v46 }
 0x3e1   :  { %6872 = vmatmul.mubr.msk.f32.vlgmr.msra.gmra.mrb[4].mxu0 %vm127_vm3, %v6869_v4 }
 0x3e2   :  { %6878 = vmatpush1.msk.msra.mxu0 %vm131_vm1, %v4894_v47  ;;  %6875 = vmatmul.mubr.msk.f32.vlgmr.msra.gmra.mrb[4].mxu1 %vm127_vm3, %v6869_v4 }
 0x3e3   :  { %6881 = vmatpush1.msk.msra.mxu1 %vm131_vm1, %v4896_v0  ;;  %4979 = vmatprep.mubr.f32.mxu0 %v7087_v2 }
 0x3e4   :  { %5050 = vmatprep.mubr.f32.mxu1 %v7087_v2 }
 0x3e9   :  { %6879 = vmatmul.mubr.msk.f32.vlgmr.msra.gmra.mrb[4].mxu0 %vm127_vm3, %v6876_v5 }
 0x3ea   :  { %6882 = vmatmul.mubr.msk.f32.vlgmr.msra.gmra.mrb[4].mxu1 %vm127_vm3, %v6876_v5  ;;  %5189 = vmatprep.mubr.f32.mxu0 %v7087_v2 }
 0x3eb   :  { %5260 = vmatprep.mubr.f32.mxu1 %v7087_v2 }
 0x3ec   :  { %v5065_v7 = vpop.permute.xlu1 %5064 }
 0x4bc   :  { %v4981_v16 = vpop.f32.mrb[4].mxu0 }
 0x4bd   :  { %v5067_v8 = vadd.f32 %v5065_v7, %v4981_v16  ;;  %v4983_v31 = vpop.f32.mrb[5].mxu0  ;;  %v5052_v6 = vpop.f32.mrb[4].mxu1 }
 0x4be   :  { %v5068_v62 = vadd.f32 %v5065_v7, %v4983_v31  ;;  %v5054_v25 = vpop.f32.mrb[5].mxu1  ;;  %v5069_v14 = vadd.f32 %v5065_v7, %v5052_v6 }
 0x4bf   :  { %v8129_v23 = vmax.f32 %v5067_v8, 0.0  ;;  %v5070_v17 = vadd.f32 %v5065_v7, %v5054_v25 }
 0x4c0   :  { %v8131_v15 = vmax.f32 %v5068_v62, 0.0  ;;  %v8137_v41 = vmax.f32 %v5069_v14, 0.0  ;;  %v5091_v14 = vld [vmem:[%s8420_s8] sm:$0x7] }
 0x4c1   :  { %5092 = vrot.lane.b32.xlu0 %v8129_v23, %s7088_s17  ;;  %v8139_v11 = vmax.f32 %v5070_v17, 0.0 }
 0x4c2   :  { %5094 = vrot.lane.b32.xlu1 %v8131_v15, %s7088_s17 }
 0x4c5   :  { %5096 = vrot.lane.b32.xlu0 %v8137_v41, %s7088_s17 }
 0x4c6   :  { %5098 = vrot.lane.b32.xlu1 %v8139_v11, %s7088_s17 }
 0x4c9   :  { %5075 = vrot.lane.b32.xlu0 %v8129_v23, %s7089_s0 }
 0x4ca   :  { %5077 = vrot.lane.b32.xlu1 %v8131_v15, %s7089_s0 }
 0x4cd   :  { %5079 = vrot.lane.b32.xlu0 %v8137_v41, %s7089_s0 }
 0x4ce   :  { %5081 = vrot.lane.b32.xlu1 %v8139_v11, %s7089_s0 }
 0x4d1   :  { %5424 = vrot.lane.b32.xlu0 %v8129_v23, %s7090_s18 }
 0x4d2   :  { %5426 = vrot.lane.b32.xlu1 %v8131_v15, %s7090_s18 }
 0x4d5   :  { %5428 = vrot.lane.b32.xlu0 %v8137_v41, %s7090_s18 }
 0x4d6   :  { %5430 = vrot.lane.b32.xlu1 %v8139_v11, %s7090_s18 }
 0x4d9   :  { %5603 = vrot.lane.b32.xlu0 %v8129_v23, %s7091_s19 }
 0x4da   :  { %5605 = vrot.lane.b32.xlu1 %v8131_v15, %s7091_s19 }
 0x4dd   :  { %5607 = vrot.lane.b32.xlu0 %v8137_v41, %s7091_s19 }
 0x4de   :  { %5609 = vrot.lane.b32.xlu1 %v8139_v11, %s7091_s19 }
 0x4e1   :  { %5949 = vrot.lane.b32.xlu0 %v8129_v23, %s7092_s20 }
 0x4e2   :  { %5951 = vrot.lane.b32.xlu1 %v8131_v15, %s7092_s20 }
 0x4e5   :  { %5953 = vrot.lane.b32.xlu0 %v8137_v41, %s7092_s20 }
 0x4e6   :  { %5955 = vrot.lane.b32.xlu1 %v8139_v11, %s7092_s20 }
 0x4e9   :  { %6128 = vrot.lane.b32.xlu0 %v8129_v23, %s7093_s21 }
 0x4ea   :  { %6130 = vrot.lane.b32.xlu1 %v8131_v15, %s7093_s21 }
 0x4ed   :  { %6132 = vrot.lane.b32.xlu0 %v8137_v41, %s7093_s21 }
 0x4ee   :  { %6134 = vrot.lane.b32.xlu1 %v8139_v11, %s7093_s21 }
 0x4f1   :  { %6307 = vrot.lane.b32.xlu0 %v8129_v23, %s7094_s22 }
 0x4f2   :  { %6309 = vrot.lane.b32.xlu1 %v8131_v15, %s7094_s22 }
 0x4f5   :  { %6311 = vrot.lane.b32.xlu0 %v8137_v41, %s7094_s22 }
 0x4f6   :  { %6313 = vrot.lane.b32.xlu1 %v8139_v11, %s7094_s22 }
 0x4f9   :  { %6486 = vrot.lane.b32.xlu0 %v8129_v23, %s7095_s23 }
 0x4fa   :  { %6488 = vrot.lane.b32.xlu1 %v8131_v15, %s7095_s23 }
 0x4fd   :  { %6490 = vrot.lane.b32.xlu0 %v8137_v41, %s7095_s23 }
 0x4fe   :  { %6492 = vrot.lane.b32.xlu1 %v8139_v11, %s7095_s23 }
 0x501   :  { %6668 = vperm.xlu0 %7083, %v6665_v34  }
 0x533   :  { %v5093_v42 = vpop.permute.xlu0 %5092 }
 0x534   :  { %v5095_v12 = vpop.permute.xlu1 %5094 }
 0x535   :  { %v5102_v10 = vsel %vm93_vm0, %v5093_v42, %v5095_v12 }
 0x536   :  { %v5105_v13 = vmul.f32 %v5102_v10, %v7240_v19  ;;  %v6883_v19 = vld [vmem:[%s8420_s8 + $0x4] sm:$0x7] }
 0x537   :  { %v5097_v45 = vpop.permute.xlu0 %5096 }
 0x538   :  { %v5101_v44 = vsel %vm93_vm0, %v5095_v12, %v5097_v45  ;;  %6884 = vmatprep.subr.msk.mxu0 %vm131_vm1, %v5105_v13  ;;  %v5099_v43 = vpop.permute.xlu1 %5098 }
 0x539   :  { %v5100_v46 = vsel %vm93_vm0, %v5097_v45, %v5099_v43  ;;  %v5103_v4 = vsel %vm93_vm0, %v5099_v43, %v5093_v42  ;;  %v5106_v5 = vmul.f32 %v5101_v44, %v7246_v21  ;;  %v6896_v43 = vld [vmem:[%s8420_s8 + $0x8] sm:$0x7] }
 0x53a   :  { %v5104_v47 = vmul.f32 %v5103_v4, %v7243_v20  ;;  %v5107_v0 = vmul.f32 %v5100_v46, %v7237_v18 }
 0x53b   :  { %v5076_v7 = vpop.permute.xlu0 %5075 }
 0x53c   :  { %6885 = vmatpush1.msk.msra.mxu0 %vm131_vm1, %v5104_v47  ;;  %6887 = vmatprep.subr.msk.mxu1 %vm131_vm1, %v5107_v0  ;;  %v5078_v16 = vpop.permute.xlu1 %5077 }
 0x53d   :  { %v5085_v8 = vsel %vm53_vm2, %v5076_v7, %v5078_v16  ;;  %6886 = vmatmul.mubr.msk.f32.vlgmr.msra.gmra.mrb[6].mxu0 %vm127_vm3, %v6883_v19  ;;  %6888 = vmatpush1.msk.msra.mxu1 %vm131_vm1, %v5106_v5 }
 0x53e   :  { %v5088_v18 = vmul.f32 %v5085_v8, %v7250_v24  ;;  %6889 = vmatmul.mubr.msk.f32.vlgmr.msra.gmra.mrb[6].mxu1 %vm127_vm3, %v6883_v19  ;;  %5346 = vmatprep.mubr.f32.mxu0 %v7087_v2  ;;  %v6903_v8 = vld [vmem:[%s8420_s8 + $0xc] sm:$0x7] }
 0x53f   :  { %v5080_v20 = vpop.permute.xlu0 %5079  ;;  %5417 = vmatprep.mubr.f32.mxu1 %v7087_v2 }
 0x540   :  { %v5084_v21 = vsel %vm53_vm2, %v5078_v16, %v5080_v20  ;;  %6890 = vmatprep.subr.msk.mxu0 %vm131_vm1, %v5088_v18  ;;  %v5082_v31 = vpop.permute.xlu1 %5081 }
 0x541   :  { %v5083_v6 = vsel %vm53_vm2, %v5080_v20, %v5082_v31  ;;  %v5086_v62 = vsel %vm53_vm2, %v5082_v31, %v5076_v7  ;;  %v5089_v17 = vmul.f32 %v5084_v21, %v7280_v39  ;;  %v5783_v31 = vmul.f32 %v8131_v15, %v7322_v58 }
 0x542   :  { %v5087_v24 = vmul.f32 %v5086_v62, %v7274_v37  ;;  %v5090_v25 = vmul.f32 %v5083_v6, %v7283_v40  ;;  %v6910_v6 = vld [vmem:[%s8420_s8 + $0x10] sm:$0x7] }
 0x543   :  { %v5425_v34 = vpop.permute.xlu0 %5424 }
 0x544   :  { %6891 = vmatpush1.msk.msra.mxu0 %vm131_vm1, %v5087_v24  ;;  %6893 = vmatprep.subr.msk.mxu1 %vm131_vm1, %v5090_v25  ;;  %v5427_v42 = vpop.permute.xlu1 %5426 }
 0x545   :  { %v5434_v12 = vsel %vm451_vm4, %v5425_v34, %v5427_v42  ;;  %6892 = vmatmul.mubr.msk.f32.vlgmr.msra.gmra.mrb[6].mxu0 %vm127_vm3, %v5091_v14  ;;  %6894 = vmatpush1.msk.msra.mxu1 %vm131_vm1, %v5089_v17 }
 0x546   :  { %v5437_v37 = vmul.f32 %v5434_v12, %v7302_v50  ;;  %6895 = vmatmul.mubr.msk.f32.vlgmr.msra.gmra.mrb[6].mxu1 %vm127_vm3, %v5091_v14  ;;  %5521 = vmatprep.mubr.f32.mxu0 %v7087_v2 }
 0x547   :  { %v5429_v39 = vpop.permute.xlu0 %5428  ;;  %5592 = vmatprep.mubr.f32.mxu1 %v7087_v2 }
 0x548   :  { %v5433_v40 = vsel %vm451_vm4, %v5427_v42, %v5429_v39  ;;  %6897 = vmatprep.subr.msk.mxu0 %vm131_vm1, %v5437_v37  ;;  %v5431_v10 = vpop.permute.xlu1 %5430  ;;  %v6917_v37 = vld [vmem:[%s8420_s8 + $0x14] sm:$0x7] }
 0x549   :  { %v5432_v13 = vsel %vm451_vm4, %v5429_v39, %v5431_v10  ;;  %v5435_v45 = vsel %vm451_vm4, %v5431_v10, %v5425_v34  ;;  %v5438_v46 = vmul.f32 %v5433_v40, %v7328_v60 }
 0x54a   :  { %v5436_v50 = vmul.f32 %v5435_v45, %v7316_v56  ;;  %v5439_v44 = vmul.f32 %v5432_v13, %v7331_v61 }
 0x54b   :  { %v5604_v4 = vpop.permute.xlu0 %5603 }
 0x54c   :  { %6898 = vmatpush1.msk.msra.mxu0 %vm131_vm1, %v5436_v50  ;;  %6900 = vmatprep.subr.msk.mxu1 %vm131_vm1, %v5439_v44  ;;  %v5606_v47 = vpop.permute.xlu1 %5605 }
 0x54d   :  { %v5613_v0 = vsel %vm654_vm5, %v5604_v4, %v5606_v47  ;;  %6899 = vmatmul.mubr.msk.f32.vlgmr.msra.gmra.mrb[6].mxu0 %vm127_vm3, %v6896_v43  ;;  %6901 = vmatpush1.msk.msra.mxu1 %vm131_vm1, %v5438_v46  ;;  %v6924_v46 = vld [vmem:[%s8420_s8 + $0x18] sm:$0x7] }
 0x54e   :  { %v5616_v56 = vmul.f32 %v5613_v0, %v7358_v22  ;;  %6902 = vmatmul.mubr.msk.f32.vlgmr.msra.gmra.mrb[6].mxu1 %vm127_vm3, %v6896_v43  ;;  %5700 = vmatprep.mubr.f32.mxu0 %v7087_v2 }
 0x54f   :  { %v5608_v60 = vpop.permute.xlu0 %5607  ;;  %5771 = vmatprep.mubr.f32.mxu1 %v7087_v2 }
 0x550   :  { %v5612_v61 = vsel %vm654_vm5, %v5606_v47, %v5608_v60  ;;  %6904 = vmatprep.subr.msk.mxu0 %vm131_vm1, %v5616_v56  ;;  %v5610_v19 = vpop.permute.xlu1 %5609 }
 0x551   :  { %v5611_v5 = vsel %vm654_vm5, %v5608_v60, %v5610_v19  ;;  %v5614_v7 = vsel %vm654_vm5, %v5610_v19, %v5604_v4  ;;  %v5617_v18 = vmul.f32 %v5612_v61, %v7378_v32  ;;  %v5784_v32 = vmul.f32 %v8137_v41, %v7339_v63 }
 0x552   :  { %v5615_v22 = vmul.f32 %v5614_v7, %v7371_v29  ;;  %v5618_v16 = vmul.f32 %v5611_v5, %v7381_v33  ;;  %v5782_v29 = vmul.f32 %v8129_v23, %v7319_v57  ;;  %v5785_v33 = vmul.f32 %v8139_v11, %v7342_v3  ;;  %v6931_v7 = vld [vmem:[%s8420_s8 + $0x1c] sm:$0x7] }
 0x553   :  { %v5950_v20 = vpop.permute.xlu0 %5949 }
 0x554   :  { %6905 = vmatpush1.msk.msra.mxu0 %vm131_vm1, %v5615_v22  ;;  %6907 = vmatprep.subr.msk.mxu1 %vm131_vm1, %v5618_v16  ;;  %v5952_v21 = vpop.permute.xlu1 %5951 }
 0x555   :  { %6906 = vmatmul.mubr.msk.f32.vlgmr.msra.gmra.mrb[6].mxu0 %vm127_vm3, %v6903_v8  ;;  %6908 = vmatpush1.msk.msra.mxu1 %vm131_vm1, %v5617_v18  ;;  %v5959_v3 = vsel %vm1049_vm6, %v5950_v20, %v5952_v21 }
 0x556   :  { %6911 = vmatprep.subr.msk.mxu0 %vm131_vm1, %v5783_v31  ;;  %6909 = vmatmul.mubr.msk.f32.vlgmr.msra.gmra.mrb[6].mxu1 %vm127_vm3, %v6903_v8  ;;  %v5961_v24 = vmul.f32 %v5959_v3, %v7416_v53 }
 0x557   :  { %6912 = vmatpush1.msk.msra.mxu0 %vm131_vm1, %v5782_v29  ;;  %6914 = vmatprep.subr.msk.mxu1 %vm131_vm1, %v5785_v33  ;;  %v5954_v58 = vpop.permute.xlu0 %5953 }
 0x558   :  { %v5958_v15 = vsel %vm1049_vm6, %v5952_v21, %v5954_v58  ;;  %6915 = vmatpush1.msk.msra.mxu1 %vm131_vm1, %v5784_v32  ;;  %v5956_v57 = vpop.permute.xlu1 %5955  ;;  %5867 = vmatprep.mubr.f32.mxu0 %v7087_v2 }
 0x559   :  { %v5962_v23 = vmul.f32 %v5958_v15, %v7410_v51  ;;  %v5960_v63 = vsel %vm1049_vm6, %v5956_v57, %v5950_v20  ;;  %5938 = vmatprep.mubr.f32.mxu1 %v7087_v2  ;;  %v5957_v41 = vsel %vm1049_vm6, %v5954_v58, %v5956_v57 }
 0x55a   :  { %v5964_v11 = vmul.f32 %v5960_v63, %v7413_v52  ;;  %v5963_v25 = vmul.f32 %v5957_v41, %v7419_v54 }
 0x55b   :  { %v6129_v62 = vpop.permute.xlu0 %6128  ;;  %6918 = vmatprep.subr.msk.mxu0 %vm131_vm1, %v5962_v23 }
 0x55c   :  { %6921 = vmatprep.subr.msk.mxu1 %vm131_vm1, %v5964_v11  ;;  %v6131_v51 = vpop.permute.xlu1 %6130 }
 0x55d   :  { %6913 = vmatmul.mubr.msk.f32.vlgmr.msra.gmra.mrb[6].mxu0 %vm127_vm3, %v6910_v6  ;;  %v6138_v54 = vsel %vm1252_vm7, %v6129_v62, %v6131_v51 }
 0x55e   :  { %6919 = vmatpush1.msk.msra.mxu0 %vm131_vm1, %v5961_v24  ;;  %6916 = vmatmul.mubr.msk.f32.vlgmr.msra.gmra.mrb[6].mxu1 %vm127_vm3, %v6910_v6  ;;  %v6140_v40 = vmul.f32 %v6138_v54, %v7456_v28 }
 0x55f   :  { %6922 = vmatpush1.msk.msra.mxu1 %vm131_vm1, %v5963_v25  ;;  %v6133_v52 = vpop.permute.xlu0 %6132  ;;  %6046 = vmatprep.mubr.f32.mxu0 %v7087_v2 }
 0x560   :  { %v6137_v14 = vsel %vm1252_vm7, %v6131_v51, %v6133_v52  ;;  %v6135_v53 = vpop.permute.xlu1 %6134  ;;  %6117 = vmatprep.mubr.f32.mxu1 %v7087_v2 }
 0x561   :  { %v6141_v17 = vmul.f32 %v6137_v14, %v7450_v26  ;;  %v6139_v34 = vsel %vm1252_vm7, %v6135_v53, %v6129_v62  ;;  %v6136_v42 = vsel %vm1252_vm7, %v6133_v52, %v6135_v53 }
 0x562   :  { %v6143_v12 = vmul.f32 %v6139_v34, %v7453_v27  ;;  %v6142_v10 = vmul.f32 %v6136_v42, %v7460_v30 }
 0x563   :  { %v6308_v39 = vpop.permute.xlu0 %6307  ;;  %6925 = vmatprep.subr.msk.mxu0 %vm131_vm1, %v6141_v17 }
 0x564   :  { %6928 = vmatprep.subr.msk.mxu1 %vm131_vm1, %v6143_v12  ;;  %v6310_v26 = vpop.permute.xlu1 %6309 }
 0x565   :  { %6920 = vmatmul.mubr.msk.f32.vlgmr.msra.gmra.mrb[6].mxu0 %vm127_vm3, %v6917_v37  ;;  %v6317_v30 = vsel %vm1455_vm8, %v6308_v39, %v6310_v26 }
 0x566   :  { %6926 = vmatpush1.msk.msra.mxu0 %vm131_vm1, %v6140_v40  ;;  %6923 = vmatmul.mubr.msk.f32.vlgmr.msra.gmra.mrb[6].mxu1 %vm127_vm3, %v6917_v37  ;;  %v6319_v47 = vmul.f32 %v6317_v30, %v7495_v55 }
 0x567   :  { %6929 = vmatpush1.msk.msra.mxu1 %vm131_vm1, %v6142_v10  ;;  %v6312_v27 = vpop.permute.xlu0 %6311  ;;  %6225 = vmatprep.mubr.f32.mxu0 %v7087_v2 }
 0x568   :  { %v6316_v13 = vsel %vm1455_vm8, %v6310_v26, %v6312_v27  ;;  %v6314_v28 = vpop.permute.xlu1 %6313  ;;  %6296 = vmatprep.mubr.f32.mxu1 %v7087_v2 }
 0x569   :  { %v6320_v45 = vmul.f32 %v6316_v13, %v7489_v48  ;;  %v6318_v50 = vsel %vm1455_vm8, %v6314_v28, %v6308_v39  ;;  %v6315_v44 = vsel %vm1455_vm8, %v6312_v27, %v6314_v28 }
 0x56a   :  { %v6322_v43 = vmul.f32 %v6318_v50, %v7492_v49  ;;  %v6321_v0 = vmul.f32 %v6315_v44, %v7499_v59 }
 0x56b   :  { %v6487_v4 = vpop.permute.xlu0 %6486  ;;  %6932 = vmatprep.subr.msk.mxu0 %vm131_vm1, %v6320_v45 }
 0x56c   :  { %6935 = vmatprep.subr.msk.mxu1 %vm131_vm1, %v6322_v43  ;;  %v6489_v48 = vpop.permute.xlu1 %6488 }
 0x56d   :  { %6927 = vmatmul.mubr.msk.f32.vlgmr.msra.gmra.mrb[6].mxu0 %vm127_vm3, %v6924_v46  ;;  %v6496_v59 = vsel %vm1658_vm9, %v6487_v4, %v6489_v48 }
 0x56e   :  { %6933 = vmatpush1.msk.msra.mxu0 %vm131_vm1, %v6319_v47  ;;  %6930 = vmatmul.mubr.msk.f32.vlgmr.msra.gmra.mrb[6].mxu1 %vm127_vm3, %v6924_v46  ;;  %v6498_v22 = vmul.f32 %v6496_v59, %v7534_v36 }
 0x56f   :  { %6936 = vmatpush1.msk.msra.mxu1 %vm131_vm1, %v6321_v0  ;;  %v6491_v49 = vpop.permute.xlu0 %6490  ;;  %6404 = vmatprep.mubr.f32.mxu0 %v7087_v2 }
 0x570   :  { %v6495_v56 = vsel %vm1658_vm9, %v6489_v48, %v6491_v49  ;;  %v6493_v55 = vpop.permute.xlu1 %6492  ;;  %6475 = vmatprep.mubr.f32.mxu1 %v7087_v2 }
 0x571   :  { %v6499_v60 = vmul.f32 %v6495_v56, %v7528_v35  ;;  %v6497_v61 = vsel %vm1658_vm9, %v6493_v55, %v6487_v4  ;;  %v6494_v19 = vsel %vm1658_vm9, %v6491_v49, %v6493_v55 }
 0x572   :  { %v6501_v5 = vmul.f32 %v6497_v61, %v7531_v1  ;;  %v6500_v35 = vmul.f32 %v6494_v19, %v7538_v38 }
 0x573   :  { %6939 = vmatprep.subr.msk.mxu0 %vm131_vm1, %v6499_v60 }
 0x574   :  { %6942 = vmatprep.subr.msk.mxu1 %vm131_vm1, %v6501_v5 }
 0x575   :  { %6934 = vmatmul.mubr.msk.f32.vlgmr.msra.gmra.mrb[6].mxu0 %vm127_vm3, %v6931_v7 }
 0x576   :  { %6940 = vmatpush1.msk.msra.mxu0 %vm131_vm1, %v6498_v22  ;;  %6937 = vmatmul.mubr.msk.f32.vlgmr.msra.gmra.mrb[6].mxu1 %vm127_vm3, %v6931_v7 }
 0x577   :  { %6943 = vmatpush1.msk.msra.mxu1 %vm131_vm1, %v6500_v35  ;;  %6583 = vmatprep.mubr.f32.mxu0 %v7087_v2 }
 0x578   :  { %6654 = vmatprep.mubr.f32.mxu1 %v7087_v2 }
 0x57d   :  { %6941 = vmatmul.mubr.msk.f32.vlgmr.msra.gmra.mrb[6].mxu0 %vm127_vm3, %v6938_v9 }
 0x57e   :  { %6944 = vmatmul.mubr.msk.f32.vlgmr.msra.gmra.mrb[6].mxu1 %vm127_vm3, %v6938_v9 }
 0x580   :  { %v6669_v1 = vpop.permute.xlu0 %6668 }
 0x650   :  { %v6585_v36 = vpop.f32.mrb[6].mxu0 }
 0x651   :  { %v6671_v38 = vadd.f32 %v6669_v1, %v6585_v36  ;;  %v6587_v16 = vpop.f32.mrb[7].mxu0  ;;  %v6656_v8 = vpop.f32.mrb[6].mxu1 }
 0x652   :  { %v6672_v18 = vadd.f32 %v6669_v1, %v6587_v16  ;;  %v6673_v20 = vadd.f32 %v6669_v1, %v6656_v8  ;;  %v6658_v21 = vpop.f32.mrb[7].mxu1 }
 0x653   :  { %v6674_v31 = vadd.f32 %v6669_v1, %v6658_v21 }
 0x654   :  { %v6679_v29 = vcombine.low %v6671_v38, %v6672_v18 }
 0x655   :  { %v6680_v33 = vcombine.low %v6673_v20, %v6674_v31 }
 0x656   :  { %6683 = vst [vmem:[%s8421_s10] sm:$0x77] %v6679_v29 }
 0x657   :  { %6684 = vst [vmem:[%s8421_s10 + $0x8] sm:$0x77] %v6680_v33 }

</bundles_post_ra>
